<compile_context>
chip_gen: v7x
topology: tpu7x:2x2x1
jax: 0.10.0
libtpu: 0.0.40
codegen_flags: <defaults>
</compile_context>

<pallas_src>
import math

import jax
import jax.numpy as jnp
from jax import lax
from jax.experimental import pallas as pl
from jax.experimental.pallas import tpu as pltpu

EPS = 1e-3      # BatchNorm2d(eps=0.001)
C_BLK = 128     # lane-dense channel tile
LPAD = 8        # left halo pad inside the scratch (keeps the interior copy aligned)


def _round_up(x, m):
    return (x + m - 1) // m * m


def _make_kernel(N, H, W, RB):
    Wp = LPAD + _round_up(W + 1, 8)      # padded scratch width (multiple of 8)
    nchunks = H // RB

    def kernel(x_ref, w_ref, g_ref, b_ref, out_ref, xpad_ref):
        # x_ref   : (N, H, W, Cb)   one channel tile of the input (NHWC)
        # w_ref   : (9, Cb)         depthwise 3x3 taps, row-major (dh*3 + dw)
        # g_ref   : (1, Cb)         BN gamma
        # b_ref   : (1, Cb)         BN beta
        # out_ref : (N, H, W, Cb)
        # xpad_ref: (N, H+2, Wp, Cb) VMEM scratch, zero halo + input interior
        Cb = x_ref.shape[-1]

        # ---- build the zero-halo'd input copy in VMEM scratch ---------------
        # Borders are (re)zeroed every grid step: scratch is per-core, so we
        # must not rely on program_id == 0 having run on this core (megacore).
        xpad_ref[:, 0:1, :, :] = jnp.zeros((N, 1, Wp, Cb), jnp.float32)
        xpad_ref[:, H + 1:H + 2, :, :] = jnp.zeros((N, 1, Wp, Cb), jnp.float32)
        xpad_ref[:, :, 0:LPAD, :] = jnp.zeros((N, H + 2, LPAD, Cb), jnp.float32)
        xpad_ref[:, :, LPAD + W:Wp, :] = (
            jnp.zeros((N, H + 2, Wp - LPAD - W, Cb), jnp.float32))
        # interior copy: column offset LPAD=8 keeps this store sublane-aligned
        xpad_ref[:, 1:H + 1, LPAD:LPAD + W, :] = x_ref[...].astype(jnp.float32)

        # ---- hoist per-tap weights (loaded once, reused by every chunk) -----
        w_all = w_ref[...].astype(jnp.float32)                     # (9, Cb)
        wts = [w_all[k].reshape(1, 1, Cb) for k in range(9)]

        zero_stat = jnp.zeros((1, 1, Cb), jnp.float32)

        # ---- pass 1: depthwise conv in row chunks, fused sum / sumsq --------
        s1, s2 = zero_stat, zero_stat
        for n in range(N):                                   # static, N small
            def conv_chunk(ci, carry, n=n):
                c1, c2 = carry
                r0 = pl.multiple_of(ci * RB, RB)
                acc = jnp.zeros((RB, W, Cb), jnp.float32)
                for dh in range(3):
                    # aligned full-width row load; column shifts are value
                    # slices (register shuffles), not unaligned ref loads.
                    rows = xpad_ref[n, pl.ds(r0 + dh, RB), :, :]   # (RB, Wp, Cb)
                    for dw in range(3):
                        tap = rows[:, LPAD - 1 + dw:LPAD - 1 + dw + W, :]
                        acc = acc + tap * wts[dh * 3 + dw]
                out_ref[n, pl.ds(r0, RB), :, :] = acc.astype(out_ref.dtype)
                c1 = c1 + jnp.sum(acc, axis=(0, 1), keepdims=True)
                c2 = c2 + jnp.sum(acc * acc, axis=(0, 1), keepdims=True)
                return c1, c2

            s1, s2 = lax.fori_loop(0, nchunks, conv_chunk, (s1, s2))

        # ---- BN factors from batch statistics (training-mode forward) -------
        inv_cnt = jnp.float32(1.0 / (N * H * W))
        mean = s1 * inv_cnt
        var = s2 * inv_cnt - mean * mean              # biased variance
        inv = lax.rsqrt(var + EPS)
        gamma = g_ref[...].astype(jnp.float32).reshape(1, 1, Cb)
        beta = b_ref[...].astype(jnp.float32).reshape(1, 1, Cb)
        scale = gamma * inv                           # (1, 1, Cb)
        shift = beta - mean * scale                   # (1, 1, Cb)

        # ---- pass 2: single in-place normalize of out_ref -------------------
        for n in range(N):
            def norm_chunk(ci, _, n=n):
                r0 = pl.multiple_of(ci * RB, RB)
                blk = out_ref[n, pl.ds(r0, RB), :, :].astype(jnp.float32)
                out_ref[n, pl.ds(r0, RB), :, :] = (
                    blk * scale + shift).astype(out_ref.dtype)
                return 0

            lax.fori_loop(0, nchunks, norm_chunk, 0)

    return kernel, Wp


def dwconv3x3_batchnorm(x_nchw, weight_oihw, gamma, beta):
    """x_nchw: (N, C, H, W); weight_oihw: (C, 1, 3, 3); gamma/beta: (C,)."""
    N, C, H, W = x_nchw.shape
    Cpad = _round_up(C, C_BLK)
    cpad = Cpad - C

    # NCHW -> NHWC (channels on lanes) and pad C to a lane-dense multiple of 128.
    # TODO(synk): keep the surrounding model in NHWC to avoid these transposes.
    x = jnp.transpose(x_nchw, (0, 2, 3, 1))
    w = jnp.transpose(weight_oihw[:, 0, :, :], (1, 2, 0)).reshape(9, C)
    g = gamma.reshape(1, C)
    b = beta.reshape(1, C)
    if cpad:
        x = jnp.pad(x, ((0, 0), (0, 0), (0, 0), (0, cpad)))
        w = jnp.pad(w, ((0, 0), (0, cpad)))
        g = jnp.pad(g, ((0, 0), (0, cpad)))
        b = jnp.pad(b, ((0, 0), (0, cpad)))

    RB = math.gcd(H, 4)   # row-chunk size; keeps the accumulator register-sized
    kernel, Wp = _make_kernel(N, H, W, RB)

    out_nhwc = pl.pallas_call(
        kernel,
        out_shape=jax.ShapeDtypeStruct((N, H, W, Cpad), x.dtype),
        grid_spec=pltpu.PrefetchScalarGridSpec(
            num_scalar_prefetch=0,
            grid=(Cpad // C_BLK,),
            in_specs=[
                pl.BlockSpec((N, H, W, C_BLK), lambda c: (0, 0, 0, c)),
                pl.BlockSpec((9, C_BLK), lambda c: (0, c)),
                pl.BlockSpec((1, C_BLK), lambda c: (0, c)),
                pl.BlockSpec((1, C_BLK), lambda c: (0, c)),
            ],
            out_specs=pl.BlockSpec((N, H, W, C_BLK), lambda c: (0, 0, 0, c)),
            scratch_shapes=[pltpu.VMEM((N, H + 2, Wp, C_BLK), jnp.float32)],
        ),
        compiler_params=pltpu.CompilerParams(
            dimension_semantics=("parallel",),
            vmem_limit_bytes=32 * 1024 * 1024),
    )(x, w, g, b)

    out_nhwc = out_nhwc[..., :C]
    return jnp.transpose(out_nhwc, (0, 3, 1, 2))      # back to NCHW

# TODO(synk): running_mean/running_var buffer updates (momentum=0.01) are a
# training side effect of BatchNorm2d and are not produced here (output tensor
# does not depend on them).


def _reference(x_nchw, weight_oihw, gamma, beta):
    """Pure-JAX reference matching the PyTorch training-mode forward."""
    N, C, H, W = x_nchw.shape
    x = jnp.transpose(x_nchw, (0, 2, 3, 1)).astype(jnp.float32)
    xpad = jnp.pad(x, ((0, 0), (1, 1), (1, 1), (0, 0)))
    w = jnp.transpose(weight_oihw[:, 0, :, :], (1, 2, 0)).astype(jnp.float32)
    acc = jnp.zeros((N, H, W, C), jnp.float32)
    for dh in range(3):
        for dw in range(3):
            acc = acc + xpad[:, dh:dh + H, dw:dw + W, :] * w[dh, dw]
    mean = acc.mean(axis=(0, 1, 2), keepdims=True)
    var = acc.var(axis=(0, 1, 2), keepdims=True)
    y = (acc - mean) * jax.lax.rsqrt(var + EPS)
    y = y * gamma.reshape(1, 1, 1, C) + beta.reshape(1, 1, 1, C)
    return jnp.transpose(y, (0, 3, 1, 2))


if __name__ == "__main__":
    # Small shapes consistent with the module (orig: N=1, C=240, H=W=56).
    N, C, H, W = 2, 240, 16, 16

    key = jax.random.PRNGKey(0)
    kx, kw, kg, kb = jax.random.split(key, 4)
    x = jax.random.normal(kx, (N, C, H, W), dtype=jnp.float32)
    # Conv2d(240, 240, 3, groups=240, bias=False) -> weight (C, 1, 3, 3)
    weight = 0.1 * jax.random.normal(kw, (C, 1, 3, 3), dtype=jnp.float32)
    # BatchNorm2d(240, affine=True) -> gamma, beta of shape (C,)
    gamma = 1.0 + 0.05 * jax.random.normal(kg, (C,), dtype=jnp.float32)
    beta = 0.05 * jax.random.normal(kb, (C,), dtype=jnp.float32)

    fn = jax.jit(dwconv3x3_batchnorm)
    out = jax.block_until_ready(fn(x, weight, gamma, beta))
    ref = jax.block_until_ready(_reference(x, weight, gamma, beta))

    assert out.shape == (N, C, H, W)
    err = float(jnp.max(jnp.abs(out - ref)))
    assert jnp.allclose(out, ref, atol=1e-3, rtol=1e-3), f"mismatch vs reference (max abs err {err})"

    print("KERNEL_OK")
</pallas_src>

<mosaic_0001>
module attributes {stable_mosaic.version = 11 : i64} {
  func.func @kernel(%arg0: i32, %arg1: memref<2x16x16x128xf32, #tpu.memory_space<vmem>>, %arg2: memref<9x128xf32, #tpu.memory_space<vmem>>, %arg3: memref<1x128xf32, #tpu.memory_space<vmem>>, %arg4: memref<1x128xf32, #tpu.memory_space<vmem>>, %arg5: memref<2x16x16x128xf32, #tpu.memory_space<vmem>>, %arg6: memref<2x18x32x128xf32, #tpu.memory_space<vmem>>) attributes {dimension_semantics = [#tpu.dimension_semantics<parallel>], iteration_bounds = array<i64: 2>, scalar_prefetch = 0 : i64, scratch_operands = 1 : i64, tpu.core_type = #tpu.core_type<tc>, window_params = [{transform_indices = @transform_0, window_bounds = array<i64: 2, 16, 16, 128>}, {transform_indices = @transform_1, window_bounds = array<i64: 9, 128>}, {transform_indices = @transform_2, window_bounds = array<i64: 1, 128>}, {transform_indices = @transform_3, window_bounds = array<i64: 1, 128>}, {transform_indices = @transform_4, window_bounds = array<i64: 2, 16, 16, 128>}]} {
    %cst = arith.constant 0.000000e+00 : f32
    %0 = vector.broadcast %cst : f32 to vector<2x1x32x128xf32>
    %c0 = arith.constant 0 : index
    %c0_0 = arith.constant 0 : index
    %c0_1 = arith.constant 0 : index
    %c0_2 = arith.constant 0 : index
    %1 = vector.load %arg6[%c0, %c0_0, %c0_1, %c0_2] : memref<2x18x32x128xf32, #tpu.memory_space<vmem>>, vector<2x1x32x128xf32>
    tpu.vector_store %arg6[%c0, %c0_0, %c0_1, %c0_2], %0 {strides = array<i32>} : memref<2x18x32x128xf32, #tpu.memory_space<vmem>>, vector<2x1x32x128xf32>,
    %cst_3 = arith.constant 0.000000e+00 : f32
    %2 = vector.broadcast %cst_3 : f32 to vector<2x1x32x128xf32>
    %c0_4 = arith.constant 0 : index
    %c17 = arith.constant 17 : index
    %c0_5 = arith.constant 0 : index
    %c0_6 = arith.constant 0 : index
    %3 = vector.load %arg6[%c0_4, %c17, %c0_5, %c0_6] : memref<2x18x32x128xf32, #tpu.memory_space<vmem>>, vector<2x1x32x128xf32>
    tpu.vector_store %arg6[%c0_4, %c17, %c0_5, %c0_6], %2 {strides = array<i32>} : memref<2x18x32x128xf32, #tpu.memory_space<vmem>>, vector<2x1x32x128xf32>,
    %cst_7 = arith.constant 0.000000e+00 : f32
    %4 = vector.broadcast %cst_7 : f32 to vector<2x18x8x128xf32>
    %c0_8 = arith.constant 0 : index
    %c0_9 = arith.constant 0 : index
    %c0_10 = arith.constant 0 : index
    %c0_11 = arith.constant 0 : index
    %5 = vector.load %arg6[%c0_8, %c0_9, %c0_10, %c0_11] : memref<2x18x32x128xf32, #tpu.memory_space<vmem>>, vector<2x18x8x128xf32>
    tpu.vector_store %arg6[%c0_8, %c0_9, %c0_10, %c0_11], %4 {strides = array<i32>} : memref<2x18x32x128xf32, #tpu.memory_space<vmem>>, vector<2x18x8x128xf32>,
    %cst_12 = arith.constant 0.000000e+00 : f32
    %6 = vector.broadcast %cst_12 : f32 to vector<2x18x8x128xf32>
    %c0_13 = arith.constant 0 : index
    %c0_14 = arith.constant 0 : index
    %c24 = arith.constant 24 : index
    %c0_15 = arith.constant 0 : index
    %7 = vector.load %arg6[%c0_13, %c0_14, %c24, %c0_15] : memref<2x18x32x128xf32, #tpu.memory_space<vmem>>, vector<2x18x8x128xf32>
    tpu.vector_store %arg6[%c0_13, %c0_14, %c24, %c0_15], %6 {strides = array<i32>} : memref<2x18x32x128xf32, #tpu.memory_space<vmem>>, vector<2x18x8x128xf32>,
    %c0_16 = arith.constant 0 : index
    %c0_17 = arith.constant 0 : index
    %c0_18 = arith.constant 0 : index
    %c0_19 = arith.constant 0 : index
    %8 = vector.load %arg1[%c0_16, %c0_17, %c0_18, %c0_19] : memref<2x16x16x128xf32, #tpu.memory_space<vmem>>, vector<2x16x16x128xf32>
    %c0_20 = arith.constant 0 : index
    %c1 = arith.constant 1 : index
    %c8 = arith.constant 8 : index
    %c0_21 = arith.constant 0 : index
    %9 = vector.load %arg6[%c0_20, %c1, %c8, %c0_21] : memref<2x18x32x128xf32, #tpu.memory_space<vmem>>, vector<2x16x16x128xf32>
    tpu.vector_store %arg6[%c0_20, %c1, %c8, %c0_21], %8 {strides = array<i32>} : memref<2x18x32x128xf32, #tpu.memory_space<vmem>>, vector<2x16x16x128xf32>,
    %c0_22 = arith.constant 0 : index
    %c0_23 = arith.constant 0 : index
    %10 = vector.load %arg2[%c0_22, %c0_23] : memref<9x128xf32, #tpu.memory_space<vmem>>, vector<9x128xf32>
    %11 = vector.extract_strided_slice %10 {offsets = [0, 0], sizes = [1, 128], strides = [1, 1]} : vector<9x128xf32> to vector<1x128xf32>
    %12 = vector.shape_cast %11 : vector<1x128xf32> to vector<128xf32>
    %13 = vector.shape_cast %12 : vector<128xf32> to vector<1x1x128xf32>
    %14 = vector.extract_strided_slice %10 {offsets = [1, 0], sizes = [1, 128], strides = [1, 1]} : vector<9x128xf32> to vector<1x128xf32>
    %15 = vector.shape_cast %14 : vector<1x128xf32> to vector<128xf32>
    %16 = vector.shape_cast %15 : vector<128xf32> to vector<1x1x128xf32>
    %17 = vector.extract_strided_slice %10 {offsets = [2, 0], sizes = [1, 128], strides = [1, 1]} : vector<9x128xf32> to vector<1x128xf32>
    %18 = vector.shape_cast %17 : vector<1x128xf32> to vector<128xf32>
    %19 = vector.shape_cast %18 : vector<128xf32> to vector<1x1x128xf32>
    %20 = vector.extract_strided_slice %10 {offsets = [3, 0], sizes = [1, 128], strides = [1, 1]} : vector<9x128xf32> to vector<1x128xf32>
    %21 = vector.shape_cast %20 : vector<1x128xf32> to vector<128xf32>
    %22 = vector.shape_cast %21 : vector<128xf32> to vector<1x1x128xf32>
    %23 = vector.extract_strided_slice %10 {offsets = [4, 0], sizes = [1, 128], strides = [1, 1]} : vector<9x128xf32> to vector<1x128xf32>
    %24 = vector.shape_cast %23 : vector<1x128xf32> to vector<128xf32>
    %25 = vector.shape_cast %24 : vector<128xf32> to vector<1x1x128xf32>
    %26 = vector.extract_strided_slice %10 {offsets = [5, 0], sizes = [1, 128], strides = [1, 1]} : vector<9x128xf32> to vector<1x128xf32>
    %27 = vector.shape_cast %26 : vector<1x128xf32> to vector<128xf32>
    %28 = vector.shape_cast %27 : vector<128xf32> to vector<1x1x128xf32>
    %29 = vector.extract_strided_slice %10 {offsets = [6, 0], sizes = [1, 128], strides = [1, 1]} : vector<9x128xf32> to vector<1x128xf32>
    %30 = vector.shape_cast %29 : vector<1x128xf32> to vector<128xf32>
    %31 = vector.shape_cast %30 : vector<128xf32> to vector<1x1x128xf32>
    %32 = vector.extract_strided_slice %10 {offsets = [7, 0], sizes = [1, 128], strides = [1, 1]} : vector<9x128xf32> to vector<1x128xf32>
    %33 = vector.shape_cast %32 : vector<1x128xf32> to vector<128xf32>
    %34 = vector.shape_cast %33 : vector<128xf32> to vector<1x1x128xf32>
    %35 = vector.extract_strided_slice %10 {offsets = [8, 0], sizes = [1, 128], strides = [1, 1]} : vector<9x128xf32> to vector<1x128xf32>
    %36 = vector.shape_cast %35 : vector<1x128xf32> to vector<128xf32>
    %37 = vector.shape_cast %36 : vector<128xf32> to vector<1x1x128xf32>
    %cst_24 = arith.constant 0.000000e+00 : f32
    %38 = vector.broadcast %cst_24 : f32 to vector<1x1x128xf32>
    %c0_i32 = arith.constant 0 : i32
    %c4_i32 = arith.constant 4 : i32
    %39 = arith.addi %c0_i32, %c4_i32 : i32
    %c1_i32 = arith.constant 1 : i32
    %40:2 = scf.for %arg7 = %c0_i32 to %39 step %c1_i32 iter_args(%arg8 = %38, %arg9 = %38) -> (vector<1x1x128xf32>, vector<1x1x128xf32>)  : i32 {
      %c4_i32_45 = arith.constant 4 : i32
      %61 = arith.muli %arg7, %c4_i32_45 : i32
      %62 = tpu.assume_multiple %61, 4 : i32
      %cst_46 = arith.constant 0.000000e+00 : f32
      %63 = vector.broadcast %cst_46 : f32 to vector<4x16x128xf32>
      %c0_i32_47 = arith.constant 0 : i32
      %64 = arith.addi %62, %c0_i32_47 : i32
      %c0_48 = arith.constant 0 : index
      %65 = arith.index_cast %64 : i32 to index
      %c0_49 = arith.constant 0 : index
      %c0_50 = arith.constant 0 : index
      %66 = vector.load %arg6[%c0_48, %65, %c0_49, %c0_50] : memref<2x18x32x128xf32, #tpu.memory_space<vmem>>, vector<1x4x32x128xf32>
      %67 = vector.shape_cast %66 : vector<1x4x32x128xf32> to vector<4x32x128xf32>
      %68 = vector.extract_strided_slice %67 {offsets = [0, 7, 0], sizes = [4, 16, 128], strides = [1, 1, 1]} : vector<4x32x128xf32> to vector<4x16x128xf32>
      %69 = vector.broadcast %13 : vector<1x1x128xf32> to vector<4x16x128xf32>
      %70 = arith.mulf %68, %69 : vector<4x16x128xf32>
      %71 = arith.addf %63, %70 : vector<4x16x128xf32>
      %72 = vector.extract_strided_slice %67 {offsets = [0, 8, 0], sizes = [4, 16, 128], strides = [1, 1, 1]} : vector<4x32x128xf32> to vector<4x16x128xf32>
      %73 = vector.broadcast %16 : vector<1x1x128xf32> to vector<4x16x128xf32>
      %74 = arith.mulf %72, %73 : vector<4x16x128xf32>
      %75 = arith.addf %71, %74 : vector<4x16x128xf32>
      %76 = vector.extract_strided_slice %67 {offsets = [0, 9, 0], sizes = [4, 16, 128], strides = [1, 1, 1]} : vector<4x32x128xf32> to vector<4x16x128xf32>
      %77 = vector.broadcast %19 : vector<1x1x128xf32> to vector<4x16x128xf32>
      %78 = arith.mulf %76, %77 : vector<4x16x128xf32>
      %79 = arith.addf %75, %78 : vector<4x16x128xf32>
      %c1_i32_51 = arith.constant 1 : i32
      %80 = arith.addi %62, %c1_i32_51 : i32
      %c0_52 = arith.constant 0 : index
      %81 = arith.index_cast %80 : i32 to index
      %c0_53 = arith.constant 0 : index
      %c0_54 = arith.constant 0 : index
      %82 = vector.load %arg6[%c0_52, %81, %c0_53, %c0_54] : memref<2x18x32x128xf32, #tpu.memory_space<vmem>>, vector<1x4x32x128xf32>
      %83 = vector.shape_cast %82 : vector<1x4x32x128xf32> to vector<4x32x128xf32>
      %84 = vector.extract_strided_slice %83 {offsets = [0, 7, 0], sizes = [4, 16, 128], strides = [1, 1, 1]} : vector<4x32x128xf32> to vector<4x16x128xf32>
      %85 = vector.broadcast %22 : vector<1x1x128xf32> to vector<4x16x128xf32>
      %86 = arith.mulf %84, %85 : vector<4x16x128xf32>
      %87 = arith.addf %79, %86 : vector<4x16x128xf32>
      %88 = vector.extract_strided_slice %83 {offsets = [0, 8, 0], sizes = [4, 16, 128], strides = [1, 1, 1]} : vector<4x32x128xf32> to vector<4x16x128xf32>
      %89 = vector.broadcast %25 : vector<1x1x128xf32> to vector<4x16x128xf32>
      %90 = arith.mulf %88, %89 : vector<4x16x128xf32>
      %91 = arith.addf %87, %90 : vector<4x16x128xf32>
      %92 = vector.extract_strided_slice %83 {offsets = [0, 9, 0], sizes = [4, 16, 128], strides = [1, 1, 1]} : vector<4x32x128xf32> to vector<4x16x128xf32>
      %93 = vector.broadcast %28 : vector<1x1x128xf32> to vector<4x16x128xf32>
      %94 = arith.mulf %92, %93 : vector<4x16x128xf32>
      %95 = arith.addf %91, %94 : vector<4x16x128xf32>
      %c2_i32 = arith.constant 2 : i32
      %96 = arith.addi %62, %c2_i32 : i32
      %c0_55 = arith.constant 0 : index
      %97 = arith.index_cast %96 : i32 to index
      %c0_56 = arith.constant 0 : index
      %c0_57 = arith.constant 0 : index
      %98 = vector.load %arg6[%c0_55, %97, %c0_56, %c0_57] : memref<2x18x32x128xf32, #tpu.memory_space<vmem>>, vector<1x4x32x128xf32>
      %99 = vector.shape_cast %98 : vector<1x4x32x128xf32> to vector<4x32x128xf32>
      %100 = vector.extract_strided_slice %99 {offsets = [0, 7, 0], sizes = [4, 16, 128], strides = [1, 1, 1]} : vector<4x32x128xf32> to vector<4x16x128xf32>
      %101 = vector.broadcast %31 : vector<1x1x128xf32> to vector<4x16x128xf32>
      %102 = arith.mulf %100, %101 : vector<4x16x128xf32>
      %103 = arith.addf %95, %102 : vector<4x16x128xf32>
      %104 = vector.extract_strided_slice %99 {offsets = [0, 8, 0], sizes = [4, 16, 128], strides = [1, 1, 1]} : vector<4x32x128xf32> to vector<4x16x128xf32>
      %105 = vector.broadcast %34 : vector<1x1x128xf32> to vector<4x16x128xf32>
      %106 = arith.mulf %104, %105 : vector<4x16x128xf32>
      %107 = arith.addf %103, %106 : vector<4x16x128xf32>
      %108 = vector.extract_strided_slice %99 {offsets = [0, 9, 0], sizes = [4, 16, 128], strides = [1, 1, 1]} : vector<4x32x128xf32> to vector<4x16x128xf32>
      %109 = vector.broadcast %37 : vector<1x1x128xf32> to vector<4x16x128xf32>
      %110 = arith.mulf %108, %109 : vector<4x16x128xf32>
      %111 = arith.addf %107, %110 : vector<4x16x128xf32>
      %c0_58 = arith.constant 0 : index
      %112 = arith.index_cast %62 : i32 to index
      %c0_59 = arith.constant 0 : index
      %c0_60 = arith.constant 0 : index
      %113 = vector.load %arg5[%c0_58, %112, %c0_59, %c0_60] : memref<2x16x16x128xf32, #tpu.memory_space<vmem>>, vector<1x4x16x128xf32>
      %114 = vector.shape_cast %113 : vector<1x4x16x128xf32> to vector<4x16x128xf32>
      %115 = vector.shape_cast %111 : vector<4x16x128xf32> to vector<1x4x16x128xf32>
      tpu.vector_store %arg5[%c0_58, %112, %c0_59, %c0_60], %115 {strides = array<i32>} : memref<2x16x16x128xf32, #tpu.memory_space<vmem>>, vector<1x4x16x128xf32>,
      %cst_61 = arith.constant dense<0.000000e+00> : vector<128xf32>
      %116 = vector.multi_reduction <add>, %111, %cst_61 [0, 1] : vector<4x16x128xf32> to vector<128xf32>
      %117 = vector.shape_cast %116 : vector<128xf32> to vector<1x1x128xf32>
      %118 = arith.addf %arg8, %117 : vector<1x1x128xf32>
      %119 = arith.mulf %111, %111 : vector<4x16x128xf32>
      %cst_62 = arith.constant dense<0.000000e+00> : vector<128xf32>
      %120 = vector.multi_reduction <add>, %119, %cst_62 [0, 1] : vector<4x16x128xf32> to vector<128xf32>
      %121 = vector.shape_cast %120 : vector<128xf32> to vector<1x1x128xf32>
      %122 = arith.addf %arg9, %121 : vector<1x1x128xf32>
      scf.yield %118, %122 : vector<1x1x128xf32>, vector<1x1x128xf32>
    }
    %c4_i32_25 = arith.constant 4 : i32
    %c0_i32_26 = arith.constant 0 : i32
    %c4_i32_27 = arith.constant 4 : i32
    %41 = arith.addi %c0_i32_26, %c4_i32_27 : i32
    %c1_i32_28 = arith.constant 1 : i32
    %42:2 = scf.for %arg7 = %c0_i32_26 to %41 step %c1_i32_28 iter_args(%arg8 = %40#0, %arg9 = %40#1) -> (vector<1x1x128xf32>, vector<1x1x128xf32>)  : i32 {
      %c4_i32_45 = arith.constant 4 : i32
      %61 = arith.muli %arg7, %c4_i32_45 : i32
      %62 = tpu.assume_multiple %61, 4 : i32
      %cst_46 = arith.constant 0.000000e+00 : f32
      %63 = vector.broadcast %cst_46 : f32 to vector<4x16x128xf32>
      %c0_i32_47 = arith.constant 0 : i32
      %64 = arith.addi %62, %c0_i32_47 : i32
      %c1_48 = arith.constant 1 : index
      %65 = arith.index_cast %64 : i32 to index
      %c0_49 = arith.constant 0 : index
      %c0_50 = arith.constant 0 : index
      %66 = vector.load %arg6[%c1_48, %65, %c0_49, %c0_50] : memref<2x18x32x128xf32, #tpu.memory_space<vmem>>, vector<1x4x32x128xf32>
      %67 = vector.shape_cast %66 : vector<1x4x32x128xf32> to vector<4x32x128xf32>
      %68 = vector.extract_strided_slice %67 {offsets = [0, 7, 0], sizes = [4, 16, 128], strides = [1, 1, 1]} : vector<4x32x128xf32> to vector<4x16x128xf32>
      %69 = vector.broadcast %13 : vector<1x1x128xf32> to vector<4x16x128xf32>
      %70 = arith.mulf %68, %69 : vector<4x16x128xf32>
      %71 = arith.addf %63, %70 : vector<4x16x128xf32>
      %72 = vector.extract_strided_slice %67 {offsets = [0, 8, 0], sizes = [4, 16, 128], strides = [1, 1, 1]} : vector<4x32x128xf32> to vector<4x16x128xf32>
      %73 = vector.broadcast %16 : vector<1x1x128xf32> to vector<4x16x128xf32>
      %74 = arith.mulf %72, %73 : vector<4x16x128xf32>
      %75 = arith.addf %71, %74 : vector<4x16x128xf32>
      %76 = vector.extract_strided_slice %67 {offsets = [0, 9, 0], sizes = [4, 16, 128], strides = [1, 1, 1]} : vector<4x32x128xf32> to vector<4x16x128xf32>
      %77 = vector.broadcast %19 : vector<1x1x128xf32> to vector<4x16x128xf32>
      %78 = arith.mulf %76, %77 : vector<4x16x128xf32>
      %79 = arith.addf %75, %78 : vector<4x16x128xf32>
      %c1_i32_51 = arith.constant 1 : i32
      %80 = arith.addi %62, %c1_i32_51 : i32
      %c1_52 = arith.constant 1 : index
      %81 = arith.index_cast %80 : i32 to index
      %c0_53 = arith.constant 0 : index
      %c0_54 = arith.constant 0 : index
      %82 = vector.load %arg6[%c1_52, %81, %c0_53, %c0_54] : memref<2x18x32x128xf32, #tpu.memory_space<vmem>>, vector<1x4x32x128xf32>
      %83 = vector.shape_cast %82 : vector<1x4x32x128xf32> to vector<4x32x128xf32>
      %84 = vector.extract_strided_slice %83 {offsets = [0, 7, 0], sizes = [4, 16, 128], strides = [1, 1, 1]} : vector<4x32x128xf32> to vector<4x16x128xf32>
      %85 = vector.broadcast %22 : vector<1x1x128xf32> to vector<4x16x128xf32>
      %86 = arith.mulf %84, %85 : vector<4x16x128xf32>
      %87 = arith.addf %79, %86 : vector<4x16x128xf32>
      %88 = vector.extract_strided_slice %83 {offsets = [0, 8, 0], sizes = [4, 16, 128], strides = [1, 1, 1]} : vector<4x32x128xf32> to vector<4x16x128xf32>
      %89 = vector.broadcast %25 : vector<1x1x128xf32> to vector<4x16x128xf32>
      %90 = arith.mulf %88, %89 : vector<4x16x128xf32>
      %91 = arith.addf %87, %90 : vector<4x16x128xf32>
      %92 = vector.extract_strided_slice %83 {offsets = [0, 9, 0], sizes = [4, 16, 128], strides = [1, 1, 1]} : vector<4x32x128xf32> to vector<4x16x128xf32>
      %93 = vector.broadcast %28 : vector<1x1x128xf32> to vector<4x16x128xf32>
      %94 = arith.mulf %92, %93 : vector<4x16x128xf32>
      %95 = arith.addf %91, %94 : vector<4x16x128xf32>
      %c2_i32 = arith.constant 2 : i32
      %96 = arith.addi %62, %c2_i32 : i32
      %c1_55 = arith.constant 1 : index
      %97 = arith.index_cast %96 : i32 to index
      %c0_56 = arith.constant 0 : index
      %c0_57 = arith.constant 0 : index
      %98 = vector.load %arg6[%c1_55, %97, %c0_56, %c0_57] : memref<2x18x32x128xf32, #tpu.memory_space<vmem>>, vector<1x4x32x128xf32>
      %99 = vector.shape_cast %98 : vector<1x4x32x128xf32> to vector<4x32x128xf32>
      %100 = vector.extract_strided_slice %99 {offsets = [0, 7, 0], sizes = [4, 16, 128], strides = [1, 1, 1]} : vector<4x32x128xf32> to vector<4x16x128xf32>
      %101 = vector.broadcast %31 : vector<1x1x128xf32> to vector<4x16x128xf32>
      %102 = arith.mulf %100, %101 : vector<4x16x128xf32>
      %103 = arith.addf %95, %102 : vector<4x16x128xf32>
      %104 = vector.extract_strided_slice %99 {offsets = [0, 8, 0], sizes = [4, 16, 128], strides = [1, 1, 1]} : vector<4x32x128xf32> to vector<4x16x128xf32>
      %105 = vector.broadcast %34 : vector<1x1x128xf32> to vector<4x16x128xf32>
      %106 = arith.mulf %104, %105 : vector<4x16x128xf32>
      %107 = arith.addf %103, %106 : vector<4x16x128xf32>
      %108 = vector.extract_strided_slice %99 {offsets = [0, 9, 0], sizes = [4, 16, 128], strides = [1, 1, 1]} : vector<4x32x128xf32> to vector<4x16x128xf32>
      %109 = vector.broadcast %37 : vector<1x1x128xf32> to vector<4x16x128xf32>
      %110 = arith.mulf %108, %109 : vector<4x16x128xf32>
      %111 = arith.addf %107, %110 : vector<4x16x128xf32>
      %c1_58 = arith.constant 1 : index
      %112 = arith.index_cast %62 : i32 to index
      %c0_59 = arith.constant 0 : index
      %c0_60 = arith.constant 0 : index
      %113 = vector.load %arg5[%c1_58, %112, %c0_59, %c0_60] : memref<2x16x16x128xf32, #tpu.memory_space<vmem>>, vector<1x4x16x128xf32>
      %114 = vector.shape_cast %113 : vector<1x4x16x128xf32> to vector<4x16x128xf32>
      %115 = vector.shape_cast %111 : vector<4x16x128xf32> to vector<1x4x16x128xf32>
      tpu.vector_store %arg5[%c1_58, %112, %c0_59, %c0_60], %115 {strides = array<i32>} : memref<2x16x16x128xf32, #tpu.memory_space<vmem>>, vector<1x4x16x128xf32>,
      %cst_61 = arith.constant dense<0.000000e+00> : vector<128xf32>
      %116 = vector.multi_reduction <add>, %111, %cst_61 [0, 1] : vector<4x16x128xf32> to vector<128xf32>
      %117 = vector.shape_cast %116 : vector<128xf32> to vector<1x1x128xf32>
      %118 = arith.addf %arg8, %117 : vector<1x1x128xf32>
      %119 = arith.mulf %111, %111 : vector<4x16x128xf32>
      %cst_62 = arith.constant dense<0.000000e+00> : vector<128xf32>
      %120 = vector.multi_reduction <add>, %119, %cst_62 [0, 1] : vector<4x16x128xf32> to vector<128xf32>
      %121 = vector.shape_cast %120 : vector<128xf32> to vector<1x1x128xf32>
      %122 = arith.addf %arg9, %121 : vector<1x1x128xf32>
      scf.yield %118, %122 : vector<1x1x128xf32>, vector<1x1x128xf32>
    }
    %c4_i32_29 = arith.constant 4 : i32
    %cst_30 = arith.constant 0.001953125 : f32
    %43 = vector.broadcast %cst_30 : f32 to vector<1x1x128xf32>
    %44 = arith.mulf %42#0, %43 : vector<1x1x128xf32>
    %cst_31 = arith.constant 0.001953125 : f32
    %45 = vector.broadcast %cst_31 : f32 to vector<1x1x128xf32>
    %46 = arith.mulf %42#1, %45 : vector<1x1x128xf32>
    %47 = arith.mulf %44, %44 : vector<1x1x128xf32>
    %48 = arith.subf %46, %47 : vector<1x1x128xf32>
    %cst_32 = arith.constant 1.000000e-03 : f32
    %49 = vector.broadcast %cst_32 : f32 to vector<1x1x128xf32>
    %50 = arith.addf %48, %49 : vector<1x1x128xf32>
    %51 = math.rsqrt %50 : vector<1x1x128xf32>
    %c0_33 = arith.constant 0 : index
    %c0_34 = arith.constant 0 : index
    %52 = vector.load %arg3[%c0_33, %c0_34] : memref<1x128xf32, #tpu.memory_space<vmem>>, vector<1x128xf32>
    %53 = vector.shape_cast %52 : vector<1x128xf32> to vector<1x1x128xf32>
    %c0_35 = arith.constant 0 : index
    %c0_36 = arith.constant 0 : index
    %54 = vector.load %arg4[%c0_35, %c0_36] : memref<1x128xf32, #tpu.memory_space<vmem>>, vector<1x128xf32>
    %55 = vector.shape_cast %54 : vector<1x128xf32> to vector<1x1x128xf32>
    %56 = arith.mulf %53, %51 : vector<1x1x128xf32>
    %57 = arith.mulf %44, %56 : vector<1x1x128xf32>
    %58 = arith.subf %55, %57 : vector<1x1x128xf32>
    %c0_i32_37 = arith.constant 0 : i32
    %c4_i32_38 = arith.constant 4 : i32
    %59 = arith.addi %c0_i32_37, %c4_i32_38 : i32
    %c1_i32_39 = arith.constant 1 : i32
    scf.for %arg7 = %c0_i32_37 to %59 step %c1_i32_39  : i32 {
      %c4_i32_45 = arith.constant 4 : i32
      %61 = arith.muli %arg7, %c4_i32_45 : i32
      %62 = tpu.assume_multiple %61, 4 : i32
      %c0_46 = arith.constant 0 : index
      %63 = arith.index_cast %62 : i32 to index
      %c0_47 = arith.constant 0 : index
      %c0_48 = arith.constant 0 : index
      %64 = vector.load %arg5[%c0_46, %63, %c0_47, %c0_48] : memref<2x16x16x128xf32, #tpu.memory_space<vmem>>, vector<1x4x16x128xf32>
      %65 = vector.shape_cast %64 : vector<1x4x16x128xf32> to vector<4x16x128xf32>
      %66 = vector.broadcast %56 : vector<1x1x128xf32> to vector<4x16x128xf32>
      %67 = arith.mulf %65, %66 : vector<4x16x128xf32>
      %68 = vector.broadcast %58 : vector<1x1x128xf32> to vector<4x16x128xf32>
      %69 = arith.addf %67, %68 : vector<4x16x128xf32>
      %c0_49 = arith.constant 0 : index
      %70 = arith.index_cast %62 : i32 to index
      %c0_50 = arith.constant 0 : index
      %c0_51 = arith.constant 0 : index
      %71 = vector.load %arg5[%c0_49, %70, %c0_50, %c0_51] : memref<2x16x16x128xf32, #tpu.memory_space<vmem>>, vector<1x4x16x128xf32>
      %72 = vector.shape_cast %71 : vector<1x4x16x128xf32> to vector<4x16x128xf32>
      %73 = vector.shape_cast %69 : vector<4x16x128xf32> to vector<1x4x16x128xf32>
      tpu.vector_store %arg5[%c0_49, %70, %c0_50, %c0_51], %73 {strides = array<i32>} : memref<2x16x16x128xf32, #tpu.memory_space<vmem>>, vector<1x4x16x128xf32>,
    }
    %c4_i32_40 = arith.constant 4 : i32
    %c0_i32_41 = arith.constant 0 : i32
    %c4_i32_42 = arith.constant 4 : i32
    %60 = arith.addi %c0_i32_41, %c4_i32_42 : i32
    %c1_i32_43 = arith.constant 1 : i32
    scf.for %arg7 = %c0_i32_41 to %60 step %c1_i32_43  : i32 {
      %c4_i32_45 = arith.constant 4 : i32
      %61 = arith.muli %arg7, %c4_i32_45 : i32
      %62 = tpu.assume_multiple %61, 4 : i32
      %c1_46 = arith.constant 1 : index
      %63 = arith.index_cast %62 : i32 to index
      %c0_47 = arith.constant 0 : index
      %c0_48 = arith.constant 0 : index
      %64 = vector.load %arg5[%c1_46, %63, %c0_47, %c0_48] : memref<2x16x16x128xf32, #tpu.memory_space<vmem>>, vector<1x4x16x128xf32>
      %65 = vector.shape_cast %64 : vector<1x4x16x128xf32> to vector<4x16x128xf32>
      %66 = vector.broadcast %56 : vector<1x1x128xf32> to vector<4x16x128xf32>
      %67 = arith.mulf %65, %66 : vector<4x16x128xf32>
      %68 = vector.broadcast %58 : vector<1x1x128xf32> to vector<4x16x128xf32>
      %69 = arith.addf %67, %68 : vector<4x16x128xf32>
      %c1_49 = arith.constant 1 : index
      %70 = arith.index_cast %62 : i32 to index
      %c0_50 = arith.constant 0 : index
      %c0_51 = arith.constant 0 : index
      %71 = vector.load %arg5[%c1_49, %70, %c0_50, %c0_51] : memref<2x16x16x128xf32, #tpu.memory_space<vmem>>, vector<1x4x16x128xf32>
      %72 = vector.shape_cast %71 : vector<1x4x16x128xf32> to vector<4x16x128xf32>
      %73 = vector.shape_cast %69 : vector<4x16x128xf32> to vector<1x4x16x128xf32>
      tpu.vector_store %arg5[%c1_49, %70, %c0_50, %c0_51], %73 {strides = array<i32>} : memref<2x16x16x128xf32, #tpu.memory_space<vmem>>, vector<1x4x16x128xf32>,
    }
    %c4_i32_44 = arith.constant 4 : i32
    return
  }
  func.func @transform_0(%arg0: i32) -> (i32, i32, i32, i32) {
    %c0_i32 = arith.constant 0 : i32
    %c0_i32_0 = arith.constant 0 : i32
    %c0_i32_1 = arith.constant 0 : i32
    %c0_i32_2 = arith.constant 0 : i32
    return %c0_i32, %c0_i32_0, %c0_i32_1, %arg0 : i32, i32, i32, i32
  }
  func.func @transform_1(%arg0: i32) -> (i32, i32) {
    %c0_i32 = arith.constant 0 : i32
    %c0_i32_0 = arith.constant 0 : i32
    return %c0_i32, %arg0 : i32, i32
  }
  func.func @transform_2(%arg0: i32) -> (i32, i32) {
    %c0_i32 = arith.constant 0 : i32
    %c0_i32_0 = arith.constant 0 : i32
    return %c0_i32, %arg0 : i32, i32
  }
  func.func @transform_3(%arg0: i32) -> (i32, i32) {
    %c0_i32 = arith.constant 0 : i32
    %c0_i32_0 = arith.constant 0 : i32
    return %c0_i32, %arg0 : i32, i32
  }
  func.func @transform_4(%arg0: i32) -> (i32, i32, i32, i32) {
    %c0_i32 = arith.constant 0 : i32
    %c0_i32_0 = arith.constant 0 : i32
    %c0_i32_1 = arith.constant 0 : i32
    %c0_i32_2 = arith.constant 0 : i32
    return %c0_i32, %c0_i32_0, %c0_i32_1, %arg0 : i32, i32, i32, i32
  }
}

</mosaic_0001>

<bundles_post_ra>
// kernel: dwconv3x3_batchnorm.1
= control target key start
LH: loop header
LB: loop body
LE: loop exit
PB: predicated region body
PF: predicated region fallthrough
CT: control target
= control target key end

     0   :  { %s3047_s15 = smov 0   ;;  %s3049_s16 = smov 0   ;;  %s4501_s0 = inlined_call_operand.vmem [shape: f32[2,16,16,256], index: 0, kind: input, shape index: {}]   ;;  %s4502_s1 = inlined_call_operand.vmem [shape: f32[9,256], index: 1, kind: input, shape index: {}]   ;;  %s4503_s2 = inlined_call_operand.vmem [shape: f32[1,256], index: 2, kind: input, shape index: {}]   ;;  %s4504_s3 = inlined_call_operand.vmem [shape: f32[1,256], index: 3, kind: input, shape index: {}]   ;;  %s4505_s4 = inlined_call_operand.vmem [shape: f32[2,16,16,256], index: 4, kind: output, shape index: {}]  }
   0x1   :  { %s3051_s17 = smov 0  }
   0x2 LB: > { %s3063_s18 = sadd.s32 4294967295, %s2987_s17   ;;  %s3066_s19 = sadd.s32 1, %s2987_s17   ;;  %s2987_s17 = sphi %s3051_s17, %s4514_s17   ;;  %s2983_s16 = sphi %s3049_s16, %s4513_s16   ;;  %s2979_s15 = sphi %s3047_s15, %s4512_s15  }
   0x3   : > { %s18_s20 = ssub.s32 %s2987_s17, %s3066_s19  ;;  %s21_s21 = sadd.s32 1, %s2983_s16 }
   0x4   : > { %p19_p0 = scmp.eq.s32.totalorder %s18_s20, 0  ;;  %p28_p1 = scmp.ne.s32.totalorder %s2983_s16, %s2979_s15 }
   0x5   : > { %p29_p2 = scmp.eq.s32.totalorder %s2987_s17, 0  ;;  %p136_p3 = scmp.eq.s32.totalorder %s3063_s18, 1 }
   0x6   : > { %s3076_s22 = scalar_select %p19_p0, %s2983_s16, %s21_s21  }
   0x7   : > { %p3078_p4 = por %p29_p2, %p28_p1  ;;  %p3082_p5 = por %p136_p3, %p28_p1 }
   0x8   : > { %p2697_p6 = scmp.ge.s32.totalorder %s2987_s17, 2 }
   0xa   : > { %158 = sbr.rel (%p2697_p6) target bundleno = 60 (0x3c), region = 16 }
  0x11   : > { %161 = sbr.rel (!%p3078_p4) target bundleno = 53 (0x35), region = 20  ;;  %s163_s25 = sand.u32 (%p3078_p4), 1, %s2983_s16  }
  0x12   : > { %s2699_s26 = sshll.u32 (%p3078_p4), %s2987_s17, 3  ;;  %s2698_s27 = sshll.u32 (%p3078_p4), %s163_s25, 9 }
  0x13   : > { %s3094_s30 = scalar_lea.vmem (%p3078_p4), %s4501_s0, %s2699_s26  ;;  %s3099_s5 = scalar_lea.vmem (%p3078_p4), [#allocation3], %s2698_s27 }
  0x14   : > { %v321_v0 = vld [vmem:[%s3094_s30] sm:$0xff] (%p3078_p4)  ;;  %v323_v1 = vld [vmem:[%s3094_s30 + $0x10] sm:$0xff] (%p3078_p4) }
  0x15   : > { %v325_v2 = vld [vmem:[%s3094_s30 + $0x20] sm:$0xff] (%p3078_p4)  ;;  %322 = vst [vmem:[%s3099_s5] sm:$0xff] (%p3078_p4), %v321_v0  ;;  %324 = vst [vmem:[%s3099_s5 + $0x8] sm:$0xff] (%p3078_p4), %v323_v1  ;;  %v327_v3 = vld [vmem:[%s3094_s30 + $0x30] sm:$0xff] (%p3078_p4) }
  0x16   : > { %326 = vst [vmem:[%s3099_s5 + $0x10] sm:$0xff] (%p3078_p4), %v325_v2  ;;  %v329_v4 = vld [vmem:[%s3094_s30 + $0x40] sm:$0xff] (%p3078_p4)  ;;  %v331_v5 = vld [vmem:[%s3094_s30 + $0x50] sm:$0xff] (%p3078_p4)  ;;  %328 = vst [vmem:[%s3099_s5 + $0x18] sm:$0xff] (%p3078_p4), %v327_v3 }
  0x17   : > { %330 = vst [vmem:[%s3099_s5 + $0x20] sm:$0xff] (%p3078_p4), %v329_v4  ;;  %332 = vst [vmem:[%s3099_s5 + $0x28] sm:$0xff] (%p3078_p4), %v331_v5  ;;  %v333_v6 = vld [vmem:[%s3094_s30 + $0x60] sm:$0xff] (%p3078_p4)  ;;  %v335_v7 = vld [vmem:[%s3094_s30 + $0x70] sm:$0xff] (%p3078_p4) }
  0x18   : > { %v337_v8 = vld [vmem:[%s3094_s30 + $0x80] sm:$0xff]  ;;  %334 = vst [vmem:[%s3099_s5 + $0x30] sm:$0xff] %v333_v6  ;;  %336 = vst [vmem:[%s3099_s5 + $0x38] sm:$0xff] %v335_v7  ;;  %v339_v9 = vld [vmem:[%s3094_s30 + $0x90] sm:$0xff] }
  0x19   : > { %338 = vst [vmem:[%s3099_s5 + $0x40] sm:$0xff] %v337_v8  ;;  %v341_v10 = vld [vmem:[%s3094_s30 + $0xa0] sm:$0xff]  ;;  %v343_v11 = vld [vmem:[%s3094_s30 + $0xb0] sm:$0xff]  ;;  %340 = vst [vmem:[%s3099_s5 + $0x48] sm:$0xff] %v339_v9 }
  0x1a   : > { %342 = vst [vmem:[%s3099_s5 + $0x50] sm:$0xff] %v341_v10  ;;  %344 = vst [vmem:[%s3099_s5 + $0x58] sm:$0xff] %v343_v11  ;;  %v345_v12 = vld [vmem:[%s3094_s30 + $0xc0] sm:$0xff]  ;;  %v347_v13 = vld [vmem:[%s3094_s30 + $0xd0] sm:$0xff] }
  0x1b   : > { %v349_v14 = vld [vmem:[%s3094_s30 + $0xe0] sm:$0xff]  ;;  %346 = vst [vmem:[%s3099_s5 + $0x60] sm:$0xff] %v345_v12  ;;  %348 = vst [vmem:[%s3099_s5 + $0x68] sm:$0xff] %v347_v13  ;;  %v351_v15 = vld [vmem:[%s3094_s30 + $0xf0] sm:$0xff] }
  0x1c   : > { %350 = vst [vmem:[%s3099_s5 + $0x70] sm:$0xff] %v349_v14  ;;  %v353_v16 = vld [vmem:[%s3094_s30 + $0x100] sm:$0xff]  ;;  %v355_v17 = vld [vmem:[%s3094_s30 + $0x110] sm:$0xff]  ;;  %352 = vst [vmem:[%s3099_s5 + $0x78] sm:$0xff] %v351_v15 }
  0x1d   : > { %354 = vst [vmem:[%s3099_s5 + $0x80] sm:$0xff] %v353_v16  ;;  %356 = vst [vmem:[%s3099_s5 + $0x88] sm:$0xff] %v355_v17  ;;  %v357_v18 = vld [vmem:[%s3094_s30 + $0x120] sm:$0xff]  ;;  %v359_v19 = vld [vmem:[%s3094_s30 + $0x130] sm:$0xff] }
  0x1e   : > { %v361_v20 = vld [vmem:[%s3094_s30 + $0x140] sm:$0xff]  ;;  %358 = vst [vmem:[%s3099_s5 + $0x90] sm:$0xff] %v357_v18  ;;  %360 = vst [vmem:[%s3099_s5 + $0x98] sm:$0xff] %v359_v19  ;;  %v363_v21 = vld [vmem:[%s3094_s30 + $0x150] sm:$0xff] }
  0x1f   : > { %362 = vst [vmem:[%s3099_s5 + $0xa0] sm:$0xff] %v361_v20  ;;  %v365_v22 = vld [vmem:[%s3094_s30 + $0x160] sm:$0xff]  ;;  %v367_v23 = vld [vmem:[%s3094_s30 + $0x170] sm:$0xff]  ;;  %364 = vst [vmem:[%s3099_s5 + $0xa8] sm:$0xff] %v363_v21 }
  0x20   : > { %366 = vst [vmem:[%s3099_s5 + $0xb0] sm:$0xff] %v365_v22  ;;  %368 = vst [vmem:[%s3099_s5 + $0xb8] sm:$0xff] %v367_v23  ;;  %v369_v24 = vld [vmem:[%s3094_s30 + $0x180] sm:$0xff]  ;;  %v371_v25 = vld [vmem:[%s3094_s30 + $0x190] sm:$0xff] }
  0x21   : > { %v373_v26 = vld [vmem:[%s3094_s30 + $0x1a0] sm:$0xff]  ;;  %370 = vst [vmem:[%s3099_s5 + $0xc0] sm:$0xff] %v369_v24  ;;  %372 = vst [vmem:[%s3099_s5 + $0xc8] sm:$0xff] %v371_v25  ;;  %v375_v27 = vld [vmem:[%s3094_s30 + $0x1b0] sm:$0xff] }
  0x22   : > { %374 = vst [vmem:[%s3099_s5 + $0xd0] sm:$0xff] %v373_v26  ;;  %v377_v28 = vld [vmem:[%s3094_s30 + $0x1c0] sm:$0xff]  ;;  %v379_v29 = vld [vmem:[%s3094_s30 + $0x1d0] sm:$0xff]  ;;  %376 = vst [vmem:[%s3099_s5 + $0xd8] sm:$0xff] %v375_v27 }
  0x23   : > { %378 = vst [vmem:[%s3099_s5 + $0xe0] sm:$0xff] %v377_v28  ;;  %380 = vst [vmem:[%s3099_s5 + $0xe8] sm:$0xff] %v379_v29  ;;  %v381_v30 = vld [vmem:[%s3094_s30 + $0x1e0] sm:$0xff]  ;;  %v383_v31 = vld [vmem:[%s3094_s30 + $0x1f0] sm:$0xff] }
  0x24   : > { %v385_v32 = vld [vmem:[%s3094_s30 + $0x200] sm:$0xff]  ;;  %382 = vst [vmem:[%s3099_s5 + $0xf0] sm:$0xff] %v381_v30  ;;  %384 = vst [vmem:[%s3099_s5 + $0xf8] sm:$0xff] %v383_v31  ;;  %v387_v33 = vld [vmem:[%s3094_s30 + $0x210] sm:$0xff] }
  0x25   : > { %386 = vst [vmem:[%s3099_s5 + $0x100] sm:$0xff] %v385_v32  ;;  %v389_v34 = vld [vmem:[%s3094_s30 + $0x220] sm:$0xff]  ;;  %v391_v35 = vld [vmem:[%s3094_s30 + $0x230] sm:$0xff]  ;;  %388 = vst [vmem:[%s3099_s5 + $0x108] sm:$0xff] %v387_v33 }
  0x26   : > { %390 = vst [vmem:[%s3099_s5 + $0x110] sm:$0xff] %v389_v34  ;;  %392 = vst [vmem:[%s3099_s5 + $0x118] sm:$0xff] %v391_v35  ;;  %v393_v36 = vld [vmem:[%s3094_s30 + $0x240] sm:$0xff]  ;;  %v395_v37 = vld [vmem:[%s3094_s30 + $0x250] sm:$0xff] }
  0x27   : > { %v397_v38 = vld [vmem:[%s3094_s30 + $0x260] sm:$0xff]  ;;  %394 = vst [vmem:[%s3099_s5 + $0x120] sm:$0xff] %v393_v36  ;;  %396 = vst [vmem:[%s3099_s5 + $0x128] sm:$0xff] %v395_v37  ;;  %v399_v39 = vld [vmem:[%s3094_s30 + $0x270] sm:$0xff] }
  0x28   : > { %398 = vst [vmem:[%s3099_s5 + $0x130] sm:$0xff] %v397_v38  ;;  %v401_v40 = vld [vmem:[%s3094_s30 + $0x280] sm:$0xff]  ;;  %v403_v41 = vld [vmem:[%s3094_s30 + $0x290] sm:$0xff]  ;;  %400 = vst [vmem:[%s3099_s5 + $0x138] sm:$0xff] %v399_v39 }
  0x29   : > { %402 = vst [vmem:[%s3099_s5 + $0x140] sm:$0xff] %v401_v40  ;;  %404 = vst [vmem:[%s3099_s5 + $0x148] sm:$0xff] %v403_v41  ;;  %v405_v42 = vld [vmem:[%s3094_s30 + $0x2a0] sm:$0xff]  ;;  %v407_v43 = vld [vmem:[%s3094_s30 + $0x2b0] sm:$0xff] }
  0x2a   : > { %v409_v44 = vld [vmem:[%s3094_s30 + $0x2c0] sm:$0xff]  ;;  %406 = vst [vmem:[%s3099_s5 + $0x150] sm:$0xff] %v405_v42  ;;  %408 = vst [vmem:[%s3099_s5 + $0x158] sm:$0xff] %v407_v43  ;;  %v411_v45 = vld [vmem:[%s3094_s30 + $0x2d0] sm:$0xff] }
  0x2b   : > { %410 = vst [vmem:[%s3099_s5 + $0x160] sm:$0xff] %v409_v44  ;;  %v413_v46 = vld [vmem:[%s3094_s30 + $0x2e0] sm:$0xff]  ;;  %v415_v47 = vld [vmem:[%s3094_s30 + $0x2f0] sm:$0xff]  ;;  %412 = vst [vmem:[%s3099_s5 + $0x168] sm:$0xff] %v411_v45 }
  0x2c   : > { %414 = vst [vmem:[%s3099_s5 + $0x170] sm:$0xff] %v413_v46  ;;  %416 = vst [vmem:[%s3099_s5 + $0x178] sm:$0xff] %v415_v47  ;;  %v417_v48 = vld [vmem:[%s3094_s30 + $0x300] sm:$0xff]  ;;  %v419_v49 = vld [vmem:[%s3094_s30 + $0x310] sm:$0xff] }
  0x2d   : > { %v421_v50 = vld [vmem:[%s3094_s30 + $0x320] sm:$0xff]  ;;  %418 = vst [vmem:[%s3099_s5 + $0x180] sm:$0xff] %v417_v48  ;;  %420 = vst [vmem:[%s3099_s5 + $0x188] sm:$0xff] %v419_v49  ;;  %v423_v51 = vld [vmem:[%s3094_s30 + $0x330] sm:$0xff] }
  0x2e   : > { %422 = vst [vmem:[%s3099_s5 + $0x190] sm:$0xff] %v421_v50  ;;  %v425_v52 = vld [vmem:[%s3094_s30 + $0x340] sm:$0xff]  ;;  %v427_v53 = vld [vmem:[%s3094_s30 + $0x350] sm:$0xff]  ;;  %424 = vst [vmem:[%s3099_s5 + $0x198] sm:$0xff] %v423_v51 }
  0x2f   : > { %426 = vst [vmem:[%s3099_s5 + $0x1a0] sm:$0xff] %v425_v52  ;;  %428 = vst [vmem:[%s3099_s5 + $0x1a8] sm:$0xff] %v427_v53  ;;  %v429_v54 = vld [vmem:[%s3094_s30 + $0x360] sm:$0xff]  ;;  %v431_v55 = vld [vmem:[%s3094_s30 + $0x370] sm:$0xff] }
  0x30   : > { %v433_v56 = vld [vmem:[%s3094_s30 + $0x380] sm:$0xff]  ;;  %430 = vst [vmem:[%s3099_s5 + $0x1b0] sm:$0xff] %v429_v54  ;;  %432 = vst [vmem:[%s3099_s5 + $0x1b8] sm:$0xff] %v431_v55  ;;  %v435_v57 = vld [vmem:[%s3094_s30 + $0x390] sm:$0xff] }
  0x31   : > { %434 = vst [vmem:[%s3099_s5 + $0x1c0] sm:$0xff] %v433_v56  ;;  %v437_v58 = vld [vmem:[%s3094_s30 + $0x3a0] sm:$0xff]  ;;  %v439_v59 = vld [vmem:[%s3094_s30 + $0x3b0] sm:$0xff]  ;;  %436 = vst [vmem:[%s3099_s5 + $0x1c8] sm:$0xff] %v435_v57 }
  0x32   : > { %438 = vst [vmem:[%s3099_s5 + $0x1d0] sm:$0xff] %v437_v58  ;;  %440 = vst [vmem:[%s3099_s5 + $0x1d8] sm:$0xff] %v439_v59  ;;  %v441_v60 = vld [vmem:[%s3094_s30 + $0x3c0] sm:$0xff]  ;;  %v443_v61 = vld [vmem:[%s3094_s30 + $0x3d0] sm:$0xff] }
  0x33   : > { %v445_v62 = vld [vmem:[%s3094_s30 + $0x3e0] sm:$0xff]  ;;  %442 = vst [vmem:[%s3099_s5 + $0x1e0] sm:$0xff] %v441_v60  ;;  %444 = vst [vmem:[%s3099_s5 + $0x1e8] sm:$0xff] %v443_v61  ;;  %v447_v63 = vld [vmem:[%s3094_s30 + $0x3f0] sm:$0xff] }
  0x34   : > { %446 = vst [vmem:[%s3099_s5 + $0x1f0] sm:$0xff] %v445_v62  ;;  %448 = vst [vmem:[%s3099_s5 + $0x1f8] sm:$0xff] %v447_v63 }
  0x35 PF: > { %454 = sbr.rel (!%p3078_p4) target bundleno = 60 (0x3c), region = 58  ;;  %s456_s6 = sand.u32 (%p3078_p4), 1, %s2983_s16  }
  0x36   : > { %s2701_s7 = sshll.u32 (%p3078_p4), %s2987_s17, 3  ;;  %s2700_s8 = sshll.u32 (%p3078_p4), %s456_s6, 4 }
  0x37   : > { %s460_s11 = scalar_lea.vmem (%p3078_p4), %s4502_s1, %s2701_s7  ;;  %s458_s12 = scalar_lea.vmem (%p3078_p4), [#allocation4], %s2700_s8 }
  0x38   : > { %v490_v0 = vld [vmem:[%s460_s11] sm:$0xff] (%p3078_p4)  ;;  %v492_v1 = vld [vmem:[%s460_s11 + $0x10] sm:$0xff] (%p3078_p4) }
  0x39   : > { %491 = vst [vmem:[%s458_s12] sm:$0xff] (%p3078_p4), %v490_v0  ;;  %493 = vst [vmem:[%s458_s12 + $0x8] sm:$0xff] (%p3078_p4), %v492_v1 }
  0x3c PF: > { %p2702_p7 = scmp.ge.s32.totalorder %s2987_s17, 1  ;;  %p510_p8 = scmp.lt.s32.totalorder %s2987_s17, 3 }
  0x3e   : > { %p511_p9 = pnand %p2702_p7, %p510_p8 }
  0x3f   : > { %p558_p10 = scmp.lt.s32.totalorder (!%p511_p9), %s3063_s18, 1  ;;  %s517_s13 = sand.u32 (!%p511_p9), 1, %s2979_s15   ;;  %v3021_v2 = vmov (!%p511_p9), 0.0  }
  0x40   : > { %514 = sbr.rel (%p511_p9) target bundleno = 469 (0x1d5), region = 104  ;;  %565 = vst [vmem:[#allocation2 + $0x8] sm:$0xff] (!%p511_p9), %v3021_v2  ;;  %566 = vst [vmem:[#allocation2 + $0x10] sm:$0xff] (!%p511_p9), %v3021_v2  ;;  %s3319_s14 = sshll.u32 (!%p511_p9), %s517_s13, 9 }
  0x41   : > { %569 = vst [vmem:[#allocation2 + $0x248] sm:$0xff] (!%p511_p9), %v3021_v2  ;;  %570 = vst [vmem:[#allocation2 + $0x250] sm:$0xff] (!%p511_p9), %v3021_v2  ;;  %s2704_s17 = sshll.u32 (!%p511_p9), %s517_s13, 4  ;;  %s3337_s29 = scalar_lea.vmem (!%p511_p9), [#allocation3], %s3319_s14 }
  0x42   : > { %574 = vst [vmem:[#allocation2 + $0x228] sm:$0xff] (!%p511_p9), %v3021_v2  ;;  %575 = vst [vmem:[#allocation2 + $0x230] sm:$0xff] (!%p511_p9), %v3021_v2  ;;  %v653_v3 = vld [vmem:[%s3337_s29] sm:$0xff] (!%p511_p9)  ;;  %s526_s15 = scalar_lea.vmem (!%p511_p9), [#allocation4], %s2704_s17  ;;  %v654_v6 = vld [vmem:[%s3337_s29 + $0x8] sm:$0xff] (!%p511_p9)  ;;  %s3408_s30 = scalar_lea.vmem (!%p511_p9), [#allocation5], %s3319_s14 }
  0x43   : > { %578 = vst [vmem:[#allocation2 + $0x468] sm:$0xff] (!%p511_p9), %v3021_v2  ;;  %579 = vst [vmem:[#allocation2 + $0x470] sm:$0xff] (!%p511_p9), %v3021_v2  ;;  %v3340_v4 = vld [vmem:[%s526_s15] sm:$0xff] (!%p511_p9)  ;;  %v3342_v5 = vld [vmem:[%s526_s15 + $0x8] ss:$0 sm:$0xff] (!%p511_p9)  ;;  %s3414_s5 = smov (!%p511_p9), 0  }
  0x44   : > { %581 = vst [vmem:[#allocation2] sm:$0xff] (!%p511_p9), %v3021_v2  ;;  %582 = vst [vmem:[#allocation2 + $0x20] sm:$0xff] (!%p511_p9), %v3021_v2  ;;  %v655_v7 = vld [vmem:[%s3337_s29 + $0x10] sm:$0xff] (!%p511_p9)  ;;  %v656_v8 = vld [vmem:[%s3337_s29 + $0x18] sm:$0xff] (!%p511_p9) }
  0x45   : > { %583 = vst [vmem:[#allocation2 + $0x40] sm:$0xff] (!%p511_p9), %v3021_v2  ;;  %584 = vst [vmem:[#allocation2 + $0x60] sm:$0xff] (!%p511_p9), %v3021_v2  ;;  %v657_v9 = vld [vmem:[%s3337_s29 + $0x20] sm:$0xff] (!%p511_p9)  ;;  %v658_v10 = vld [vmem:[%s3337_s29 + $0x28] sm:$0xff] (!%p511_p9) }
  0x46   : > { %585 = vst [vmem:[#allocation2 + $0x80] sm:$0xff] (!%p511_p9), %v3021_v2  ;;  %586 = vst [vmem:[#allocation2 + $0xa0] sm:$0xff] (!%p511_p9), %v3021_v2  ;;  %v659_v11 = vld [vmem:[%s3337_s29 + $0x30] sm:$0xff] (!%p511_p9)  ;;  %v660_v12 = vld [vmem:[%s3337_s29 + $0x38] sm:$0xff] (!%p511_p9) }
  0x47   : > { %587 = vst [vmem:[#allocation2 + $0xc0] sm:$0xff] %v3021_v2  ;;  %588 = vst [vmem:[#allocation2 + $0xe0] sm:$0xff] %v3021_v2  ;;  %s3326_s20 = scalar_select %p558_p10, %s3063_s18, 1  ;;  %v661_v13 = vld [vmem:[%s3337_s29 + $0x40] sm:$0xff]  ;;  %v662_v14 = vld [vmem:[%s3337_s29 + $0x48] sm:$0xff] }
  0x48   : > { %589 = vst [vmem:[#allocation2 + $0x100] sm:$0xff] %v3021_v2  ;;  %590 = vst [vmem:[#allocation2 + $0x120] sm:$0xff] %v3021_v2  ;;  %v663_v15 = vld [vmem:[%s3337_s29 + $0x50] sm:$0xff]  ;;  %v664_v16 = vld [vmem:[%s3337_s29 + $0x58] sm:$0xff] }
  0x49   : > { %591 = vst [vmem:[#allocation2 + $0x140] sm:$0xff] %v3021_v2  ;;  %592 = vst [vmem:[#allocation2 + $0x160] sm:$0xff] %v3021_v2  ;;  %s560_s25 = scalar_lea.vmem %s4503_s2, %s3326_s20  ;;  %s563_s28 = scalar_lea.vmem %s4504_s3, %s3326_s20  ;;  %v665_v17 = vld [vmem:[%s3337_s29 + $0x60] sm:$0xff]  ;;  %v666_v18 = vld [vmem:[%s3337_s29 + $0x68] sm:$0xff] }
  0x4a   : > { %593 = vst [vmem:[#allocation2 + $0x180] sm:$0xff] %v3021_v2  ;;  %594 = vst [vmem:[#allocation2 + $0x1a0] sm:$0xff] %v3021_v2  ;;  %v667_v19 = vld [vmem:[%s3337_s29 + $0x70] sm:$0xff]  ;;  %v668_v20 = vld [vmem:[%s3337_s29 + $0x78] sm:$0xff] }
  0x4b   : > { %595 = vst [vmem:[#allocation2 + $0x1c0] sm:$0xff] %v3021_v2  ;;  %596 = vst [vmem:[#allocation2 + $0x1e0] sm:$0xff] %v3021_v2  ;;  %v669_v21 = vld [vmem:[%s3337_s29 + $0x80] sm:$0xff]  ;;  %v670_v22 = vld [vmem:[%s3337_s29 + $0x88] sm:$0xff] }
  0x4c   : > { %597 = vst [vmem:[#allocation2 + $0x200] sm:$0xff] %v3021_v2  ;;  %600 = vst [vmem:[#allocation2 + $0x260] sm:$0xff] %v3021_v2  ;;  %v671_v23 = vld [vmem:[%s3337_s29 + $0x90] sm:$0xff]  ;;  %v672_v24 = vld [vmem:[%s3337_s29 + $0x98] sm:$0xff] }
  0x4d   : > { %601 = vst [vmem:[#allocation2 + $0x280] sm:$0xff] %v3021_v2  ;;  %602 = vst [vmem:[#allocation2 + $0x2a0] sm:$0xff] %v3021_v2  ;;  %v673_v25 = vld [vmem:[%s3337_s29 + $0xa0] sm:$0xff]  ;;  %v674_v26 = vld [vmem:[%s3337_s29 + $0xa8] sm:$0xff] }
  0x4e   : > { %603 = vst [vmem:[#allocation2 + $0x2c0] sm:$0xff] %v3021_v2  ;;  %604 = vst [vmem:[#allocation2 + $0x2e0] sm:$0xff] %v3021_v2  ;;  %v675_v27 = vld [vmem:[%s3337_s29 + $0xb0] sm:$0xff]  ;;  %v676_v28 = vld [vmem:[%s3337_s29 + $0xb8] sm:$0xff] }
  0x4f   : > { %605 = vst [vmem:[#allocation2 + $0x300] sm:$0xff] %v3021_v2  ;;  %606 = vst [vmem:[#allocation2 + $0x320] sm:$0xff] %v3021_v2  ;;  %v677_v29 = vld [vmem:[%s3337_s29 + $0xc0] sm:$0xff]  ;;  %v678_v30 = vld [vmem:[%s3337_s29 + $0xc8] sm:$0xff] }
  0x50   : > { %607 = vst [vmem:[#allocation2 + $0x340] sm:$0xff] %v3021_v2  ;;  %608 = vst [vmem:[#allocation2 + $0x360] sm:$0xff] %v3021_v2  ;;  %v679_v31 = vld [vmem:[%s3337_s29 + $0xd0] sm:$0xff]  ;;  %v680_v32 = vld [vmem:[%s3337_s29 + $0xd8] sm:$0xff] }
  0x51   : > { %609 = vst [vmem:[#allocation2 + $0x380] sm:$0xff] %v3021_v2  ;;  %610 = vst [vmem:[#allocation2 + $0x3a0] sm:$0xff] %v3021_v2  ;;  %v681_v33 = vld [vmem:[%s3337_s29 + $0xe0] sm:$0xff]  ;;  %v682_v34 = vld [vmem:[%s3337_s29 + $0xe8] sm:$0xff] }
  0x52   : > { %611 = vst [vmem:[#allocation2 + $0x3c0] sm:$0xff] %v3021_v2  ;;  %612 = vst [vmem:[#allocation2 + $0x3e0] sm:$0xff] %v3021_v2  ;;  %v683_v35 = vld [vmem:[%s3337_s29 + $0xf0] sm:$0xff]  ;;  %v684_v36 = vld [vmem:[%s3337_s29 + $0xf8] sm:$0xff] }
  0x53   : > { %613 = vst [vmem:[#allocation2 + $0x400] sm:$0xff] %v3021_v2  ;;  %614 = vst [vmem:[#allocation2 + $0x420] sm:$0xff] %v3021_v2  ;;  %v685_v37 = vld [vmem:[%s3337_s29 + $0x100] sm:$0xff]  ;;  %v686_v38 = vld [vmem:[%s3337_s29 + $0x108] sm:$0xff] }
  0x54   : > { %615 = vst [vmem:[#allocation2 + $0x440] sm:$0xff] %v3021_v2  ;;  %618 = vst [vmem:[#allocation2 + $0x38] sm:$0xff] %v3021_v2  ;;  %v687_v39 = vld [vmem:[%s3337_s29 + $0x110] sm:$0xff]  ;;  %v688_v40 = vld [vmem:[%s3337_s29 + $0x118] sm:$0xff] }
  0x55   : > { %619 = vst [vmem:[#allocation2 + $0x58] sm:$0xff] %v3021_v2  ;;  %620 = vst [vmem:[#allocation2 + $0x78] sm:$0xff] %v3021_v2  ;;  %v689_v41 = vld [vmem:[%s3337_s29 + $0x120] sm:$0xff]  ;;  %v690_v42 = vld [vmem:[%s3337_s29 + $0x128] sm:$0xff] }
  0x56   : > { %621 = vst [vmem:[#allocation2 + $0x98] sm:$0xff] %v3021_v2  ;;  %622 = vst [vmem:[#allocation2 + $0xb8] sm:$0xff] %v3021_v2  ;;  %v691_v43 = vld [vmem:[%s3337_s29 + $0x130] sm:$0xff]  ;;  %v692_v44 = vld [vmem:[%s3337_s29 + $0x138] sm:$0xff] }
  0x57   : > { %623 = vst [vmem:[#allocation2 + $0xd8] sm:$0xff] %v3021_v2  ;;  %624 = vst [vmem:[#allocation2 + $0xf8] sm:$0xff] %v3021_v2  ;;  %v693_v45 = vld [vmem:[%s3337_s29 + $0x140] sm:$0xff]  ;;  %v694_v46 = vld [vmem:[%s3337_s29 + $0x148] sm:$0xff] }
  0x58   : > { %625 = vst [vmem:[#allocation2 + $0x118] sm:$0xff] %v3021_v2  ;;  %626 = vst [vmem:[#allocation2 + $0x138] sm:$0xff] %v3021_v2  ;;  %v695_v47 = vld [vmem:[%s3337_s29 + $0x150] sm:$0xff]  ;;  %v696_v48 = vld [vmem:[%s3337_s29 + $0x158] sm:$0xff] }
  0x59   : > { %627 = vst [vmem:[#allocation2 + $0x158] sm:$0xff] %v3021_v2  ;;  %628 = vst [vmem:[#allocation2 + $0x178] sm:$0xff] %v3021_v2  ;;  %v697_v49 = vld [vmem:[%s3337_s29 + $0x160] sm:$0xff]  ;;  %v698_v50 = vld [vmem:[%s3337_s29 + $0x168] sm:$0xff] }
  0x5a   : > { %629 = vst [vmem:[#allocation2 + $0x198] sm:$0xff] %v3021_v2  ;;  %630 = vst [vmem:[#allocation2 + $0x1b8] sm:$0xff] %v3021_v2  ;;  %v699_v51 = vld [vmem:[%s3337_s29 + $0x170] sm:$0xff]  ;;  %v700_v52 = vld [vmem:[%s3337_s29 + $0x178] sm:$0xff] }
  0x5b   : > { %631 = vst [vmem:[#allocation2 + $0x1d8] sm:$0xff] %v3021_v2  ;;  %632 = vst [vmem:[#allocation2 + $0x1f8] sm:$0xff] %v3021_v2  ;;  %v701_v53 = vld [vmem:[%s3337_s29 + $0x180] sm:$0xff]  ;;  %v702_v54 = vld [vmem:[%s3337_s29 + $0x188] sm:$0xff] }
  0x5c   : > { %633 = vst [vmem:[#allocation2 + $0x218] sm:$0xff] %v3021_v2  ;;  %636 = vst [vmem:[#allocation2 + $0x278] sm:$0xff] %v3021_v2  ;;  %v703_v55 = vld [vmem:[%s3337_s29 + $0x190] sm:$0xff]  ;;  %v704_v56 = vld [vmem:[%s3337_s29 + $0x198] sm:$0xff] }
  0x5d   : > { %637 = vst [vmem:[#allocation2 + $0x298] sm:$0xff] %v3021_v2  ;;  %638 = vst [vmem:[#allocation2 + $0x2b8] sm:$0xff] %v3021_v2  ;;  %v705_v57 = vld [vmem:[%s3337_s29 + $0x1a0] sm:$0xff]  ;;  %v706_v58 = vld [vmem:[%s3337_s29 + $0x1a8] sm:$0xff] }
  0x5e   : > { %639 = vst [vmem:[#allocation2 + $0x2d8] sm:$0xff] %v3021_v2  ;;  %640 = vst [vmem:[#allocation2 + $0x2f8] sm:$0xff] %v3021_v2  ;;  %v707_v59 = vld [vmem:[%s3337_s29 + $0x1b0] sm:$0xff]  ;;  %v708_v60 = vld [vmem:[%s3337_s29 + $0x1b8] sm:$0xff] }
  0x5f   : > { %641 = vst [vmem:[#allocation2 + $0x318] sm:$0xff] %v3021_v2  ;;  %642 = vst [vmem:[#allocation2 + $0x338] sm:$0xff] %v3021_v2  ;;  %v709_v61 = vld [vmem:[%s3337_s29 + $0x1c0] sm:$0xff]  ;;  %v710_v62 = vld [vmem:[%s3337_s29 + $0x1c8] sm:$0xff] }
  0x60   : > { %643 = vst [vmem:[#allocation2 + $0x358] sm:$0xff] %v3021_v2  ;;  %644 = vst [vmem:[#allocation2 + $0x378] sm:$0xff] %v3021_v2  ;;  %v711_v63 = vld [vmem:[%s3337_s29 + $0x1d0] sm:$0xff]  ;;  %v712_v0 = vld [vmem:[%s3337_s29 + $0x1d8] sm:$0xff] }
  0x61   : > { %645 = vst [vmem:[#allocation2 + $0x398] sm:$0xff] %v3021_v2  ;;  %646 = vst [vmem:[#allocation2 + $0x3b8] sm:$0xff] %v3021_v2  ;;  %v713_v1 = vld [vmem:[%s3337_s29 + $0x1e0] sm:$0xff] }
  0x62   : > { %647 = vst [vmem:[#allocation2 + $0x3d8] sm:$0xff] %v3021_v2  ;;  %648 = vst [vmem:[#allocation2 + $0x3f8] sm:$0xff] %v3021_v2 }
  0x63   : > { %649 = vst [vmem:[#allocation2 + $0x418] sm:$0xff] %v3021_v2  ;;  %650 = vst [vmem:[#allocation2 + $0x438] sm:$0xff] %v3021_v2 }
  0x64   : > { %651 = vst [vmem:[#allocation2 + $0x458] sm:$0xff] %v3021_v2  ;;  %598 = vst [vmem:[#allocation2 + $0x220] sm:$0xff] %v3021_v2 }
  0x65   : > { %599 = vst [vmem:[#allocation2 + $0x240] sm:$0xff] %v3021_v2  ;;  %616 = vst [vmem:[#allocation2 + $0x460] sm:$0xff] %v3021_v2 }
  0x66   : > { %617 = vst [vmem:[#allocation2 + $0x18] sm:$0xff] %v3021_v2  ;;  %634 = vst [vmem:[#allocation2 + $0x238] sm:$0xff] %v3021_v2 }
  0x67   : > { %635 = vst [vmem:[#allocation2 + $0x258] sm:$0xff] %v3021_v2  ;;  %652 = vst [vmem:[#allocation2 + $0x478] sm:$0xff] %v3021_v2  ;;  %v714_v2 = vld [vmem:[%s3337_s29 + $0x1e8] sm:$0xff] }
  0x68   : > { %718 = vst [vmem:[#allocation2 + $0x28] sm:$0xff] %v653_v3  ;;  %719 = vst [vmem:[#allocation2 + $0x30] sm:$0xff] %v654_v6  ;;  %v715_v3 = vld [vmem:[%s3337_s29 + $0x1f0] sm:$0xff]  ;;  %v716_v6 = vld [vmem:[%s3337_s29 + $0x1f8] sm:$0xff] }
  0x69   : > { %720 = vst [vmem:[#allocation2 + $0x48] sm:$0xff] %v655_v7  ;;  %721 = vst [vmem:[#allocation2 + $0x50] sm:$0xff] %v656_v8  ;;  %v3410_v7 = vmov 0.0   ;;  %v3412_v8 = vmov 0.0  }
  0x6a   : > { %722 = vst [vmem:[#allocation2 + $0x68] sm:$0xff] %v657_v9  ;;  %723 = vst [vmem:[#allocation2 + $0x70] sm:$0xff] %v658_v10 }
  0x6b   : > { %724 = vst [vmem:[#allocation2 + $0x88] sm:$0xff] %v659_v11  ;;  %725 = vst [vmem:[#allocation2 + $0x90] sm:$0xff] %v660_v12 }
  0x6c   : > { %726 = vst [vmem:[#allocation2 + $0xa8] sm:$0xff] %v661_v13  ;;  %727 = vst [vmem:[#allocation2 + $0xb0] sm:$0xff] %v662_v14 }
  0x6d   : > { %728 = vst [vmem:[#allocation2 + $0xc8] sm:$0xff] %v663_v15  ;;  %729 = vst [vmem:[#allocation2 + $0xd0] sm:$0xff] %v664_v16 }
  0x6e   : > { %730 = vst [vmem:[#allocation2 + $0xe8] sm:$0xff] %v665_v17  ;;  %731 = vst [vmem:[#allocation2 + $0xf0] sm:$0xff] %v666_v18 }
  0x6f   : > { %732 = vst [vmem:[#allocation2 + $0x108] sm:$0xff] %v667_v19  ;;  %733 = vst [vmem:[#allocation2 + $0x110] sm:$0xff] %v668_v20 }
  0x70   : > { %734 = vst [vmem:[#allocation2 + $0x128] sm:$0xff] %v669_v21  ;;  %735 = vst [vmem:[#allocation2 + $0x130] sm:$0xff] %v670_v22 }
  0x71   : > { %736 = vst [vmem:[#allocation2 + $0x148] sm:$0xff] %v671_v23  ;;  %737 = vst [vmem:[#allocation2 + $0x150] sm:$0xff] %v672_v24 }
  0x72   : > { %738 = vst [vmem:[#allocation2 + $0x168] sm:$0xff] %v673_v25  ;;  %739 = vst [vmem:[#allocation2 + $0x170] sm:$0xff] %v674_v26 }
  0x73   : > { %740 = vst [vmem:[#allocation2 + $0x188] sm:$0xff] %v675_v27  ;;  %741 = vst [vmem:[#allocation2 + $0x190] sm:$0xff] %v676_v28 }
  0x74   : > { %742 = vst [vmem:[#allocation2 + $0x1a8] sm:$0xff] %v677_v29  ;;  %743 = vst [vmem:[#allocation2 + $0x1b0] sm:$0xff] %v678_v30 }
  0x75   : > { %744 = vst [vmem:[#allocation2 + $0x1c8] sm:$0xff] %v679_v31  ;;  %745 = vst [vmem:[#allocation2 + $0x1d0] sm:$0xff] %v680_v32 }
  0x76   : > { %746 = vst [vmem:[#allocation2 + $0x1e8] sm:$0xff] %v681_v33  ;;  %747 = vst [vmem:[#allocation2 + $0x1f0] sm:$0xff] %v682_v34 }
  0x77   : > { %748 = vst [vmem:[#allocation2 + $0x208] sm:$0xff] %v683_v35  ;;  %749 = vst [vmem:[#allocation2 + $0x210] sm:$0xff] %v684_v36 }
  0x78   : > { %750 = vst [vmem:[#allocation2 + $0x268] sm:$0xff] %v685_v37  ;;  %751 = vst [vmem:[#allocation2 + $0x270] sm:$0xff] %v686_v38 }
  0x79   : > { %752 = vst [vmem:[#allocation2 + $0x288] sm:$0xff] %v687_v39  ;;  %753 = vst [vmem:[#allocation2 + $0x290] sm:$0xff] %v688_v40 }
  0x7a   : > { %754 = vst [vmem:[#allocation2 + $0x2a8] sm:$0xff] %v689_v41  ;;  %755 = vst [vmem:[#allocation2 + $0x2b0] sm:$0xff] %v690_v42 }
  0x7b   : > { %756 = vst [vmem:[#allocation2 + $0x2c8] sm:$0xff] %v691_v43  ;;  %757 = vst [vmem:[#allocation2 + $0x2d0] sm:$0xff] %v692_v44 }
  0x7c   : > { %758 = vst [vmem:[#allocation2 + $0x2e8] sm:$0xff] %v693_v45  ;;  %759 = vst [vmem:[#allocation2 + $0x2f0] sm:$0xff] %v694_v46 }
  0x7d   : > { %760 = vst [vmem:[#allocation2 + $0x308] sm:$0xff] %v695_v47  ;;  %761 = vst [vmem:[#allocation2 + $0x310] sm:$0xff] %v696_v48 }
  0x7e   : > { %762 = vst [vmem:[#allocation2 + $0x328] sm:$0xff] %v697_v49  ;;  %763 = vst [vmem:[#allocation2 + $0x330] sm:$0xff] %v698_v50 }
  0x7f   : > { %764 = vst [vmem:[#allocation2 + $0x348] sm:$0xff] %v699_v51  ;;  %765 = vst [vmem:[#allocation2 + $0x350] sm:$0xff] %v700_v52 }
  0x80   : > { %766 = vst [vmem:[#allocation2 + $0x368] sm:$0xff] %v701_v53  ;;  %767 = vst [vmem:[#allocation2 + $0x370] sm:$0xff] %v702_v54 }
  0x81   : > { %768 = vst [vmem:[#allocation2 + $0x388] sm:$0xff] %v703_v55  ;;  %769 = vst [vmem:[#allocation2 + $0x390] sm:$0xff] %v704_v56 }
  0x82   : > { %770 = vst [vmem:[#allocation2 + $0x3a8] sm:$0xff] %v705_v57  ;;  %771 = vst [vmem:[#allocation2 + $0x3b0] sm:$0xff] %v706_v58 }
  0x83   : > { %772 = vst [vmem:[#allocation2 + $0x3c8] sm:$0xff] %v707_v59  ;;  %773 = vst [vmem:[#allocation2 + $0x3d0] sm:$0xff] %v708_v60 }
  0x84   : > { %774 = vst [vmem:[#allocation2 + $0x3e8] sm:$0xff] %v709_v61  ;;  %775 = vst [vmem:[#allocation2 + $0x3f0] sm:$0xff] %v710_v62 }
  0x85   : > { %776 = vst [vmem:[#allocation2 + $0x408] sm:$0xff] %v711_v63  ;;  %777 = vst [vmem:[#allocation2 + $0x410] sm:$0xff] %v712_v0 }
  0x86   : > { %778 = vst [vmem:[#allocation2 + $0x428] sm:$0xff] %v713_v1  ;;  %779 = vst [vmem:[#allocation2 + $0x430] sm:$0xff] %v714_v2 }
  0x87   : > { %780 = vst [vmem:[#allocation2 + $0x448] sm:$0xff] %v715_v3  ;;  %781 = vst [vmem:[#allocation2 + $0x450] sm:$0xff] %v716_v6 }
  0x88 LB: >> { %v811_v9 = vlaneseq  ;;  %s2834_s6 = sshll.u32 %s2999_s5, 7  ;;  %vm859_vm0 = vcmask 1046528   ;;  %vm924_vm1 = vcmask 1045504   ;;  %s2837_s8 = sshll.u32 %s2999_s5, 6  ;;  %vm1345_vm2 = vcmask 1040384   ;;  %s2999_s5 = sphi %s3414_s5, %s789_s5   ;;  %v2995_v8 = vphi %v3412_v8, %v4509_v8   ;;  %v2991_v7 = vphi %v3410_v7, %v4508_v7  }
  0x89   : >> { %s3428_s7 = scalar_lea.vmem [#allocation2], %s2834_s6  ;;  %s3549_s9 = scalar_lea.vmem %s3408_s30, %s2837_s8 [#allocation5] }
  0x8a   : >> { %v812_v10 = vshrl.u32 %v811_v9, 7  ;;  %s789_s5 = sadd.s32 1, %s2999_s5  }
  0x8b   : >> { %p786_p11 = scmp.ge.s32.totalorder %s789_s5, 4  }
  0x8c   : >> { %v3426_v11 = vsub.s32 0, %v812_v10  ;;  %v841_v12 = vsub.s32 1, %v812_v10  ;;  %v898_v13 = vsub.s32 2, %v812_v10  ;;  %v990_v16 = vsub.s32 3, %v812_v10  ;;  %s3840_s10 = smov (%p786_p11), 0  }
  0x8d   : >> { %v1018_v17 = vsub.s32 4, %v812_v10  ;;  %v1074_v18 = vsub.s32 5, %v812_v10  ;;  %v1165_v22 = vsub.s32 6, %v812_v10  ;;  %v1193_v26 = vsub.s32 7, %v812_v10 }
  0x8e   : >> { %v795_v14 = vld [vmem:[%s3428_s7] sm:$0xff]  ;;  %v796_v15 = vld [vmem:[%s3428_s7 + $0x8] sm:$0xff]  ;;  %v3434_v19 = vrot.slane %v3340_v4, %v3426_v11  ;;  %v3437_v20 = vrot.slane %v3340_v4, %v841_v12  ;;  %v3440_v21 = vrot.slane %v3340_v4, %v898_v13  ;;  %v3443_v23 = vrot.slane %v3340_v4, %v990_v16  ;;  %v797_v37 = vld [vmem:[%s3428_s7 + $0x10] sm:$0xff] }
  0x8f   : >> { %v3446_v24 = vrot.slane %v3340_v4, %v1018_v17  ;;  %v3449_v25 = vrot.slane %v3340_v4, %v1074_v18  ;;  %v3455_v30 = vld [vmem:[%s3428_s7 + $0x28] sm:$0xff]  ;;  %v3458_v31 = vrot.slane %v3340_v4, %v1165_v22  ;;  %v2710_v32 = vld [vmem:[%s3428_s7 + $0x20] sm:$0xff]  ;;  %v3469_v36 = vrot.slane %v3340_v4, %v1193_v26  ;;  %v3488_v51 = vld [vmem:[%s3428_s7 + $0x30] sm:$0xff] }
  0x90   : >> { %v815_v27 = vmul.f32 %v3434_v19, %v795_v14  ;;  %v843_v28 = vmul.f32 %v3437_v20, %v796_v15  ;;  %v900_v29 = vmul.f32 %v3440_v21, %v796_v15  ;;  %v3466_v35 = vld [vmem:[%s3428_s7 + $0x48] sm:$0xff]  ;;  %v992_v40 = vmul.f32 %v2710_v32, %v3443_v23  ;;  %v3474_v41 = vld [vmem:[%s3428_s7 + $0x40] sm:$0xff]  ;;  %v3500_v60 = vld [vmem:[%s3428_s7 + $0x50] sm:$0xff] }
  0x91   : >> { %v1020_v33 = vmul.f32 %v3455_v30, %v3446_v24  ;;  %v1076_v34 = vmul.f32 %v3455_v30, %v3449_v25  ;;  %v3478_v42 = vmul.f32 %v3342_v5, %v3466_v35  ;;  %v1167_v45 = vmul.f32 %v3474_v41, %v3458_v31  ;;  %v798_v1 = vld [vmem:[%s3428_s7 + $0x18] sm:$0xff] }
  0x92   : >> { %v860_v38 = vrot.slane %v843_v28, 1  ;;  %v925_v39 = vrot.slane %v900_v29, 2  ;;  %v1195_v46 = vmul.f32 %v3466_v35, %v3469_v36  ;;  %v816_v48 = vmul.f32 %v3434_v19, %v796_v15  ;;  %v3520_v22 = vld [vmem:[%s3428_s7 + $0x38] sm:$0xff] }
  0x93   : >> { %v1036_v43 = vrot.slane %v1020_v33, 1  ;;  %v1100_v44 = vrot.slane %v1076_v34, 2  ;;  %v844_v49 = vmul.f32 %v3437_v20, %v797_v37  ;;  %v901_v50 = vmul.f32 %v3440_v21, %v797_v37 }
  0x94   : >> { %v884_v47 = vadd.f32 %v860_v38, %v815_v27  ;;  %v1211_v52 = vrot.slane %v1195_v46, 1  ;;  %v1275_v53 = vrot.slane %v3478_v42, 2  ;;  %v3493_v54 = vmul.f32 %v3488_v51, %v3446_v24 }
  0x95   : >> { %v1077_v55 = vmul.f32 %v3488_v51, %v3449_v25  ;;  %v861_v57 = vrot.slane %v844_v49, 1  ;;  %v926_v58 = vrot.slane %v901_v50, 2  ;;  %v993_v59 = vmul.f32 %v3455_v30, %v3443_v23 }
  0x96   : >> { %v957_v56 = vadd.f32 %v925_v39, %v884_v47  ;;  %v1037_v61 = vrot.slane %v3493_v54, 1  ;;  %v3505_v63 = vmul.f32 %v3500_v60, %v3469_v36  ;;  %v1252_v0 = vmul.f32 %v3342_v5, %v3500_v60 }
  0x97   : >> { %v1101_v62 = vrot.slane %v1077_v55, 2  ;;  %v862_v3 = vsel %vm859_vm0, %v860_v38, %v861_v57  ;;  %v927_v6 = vsel %vm924_vm1, %v925_v39, %v926_v58  ;;  %v817_v9 = vmul.f32 %v3434_v19, %v797_v37  ;;  %v3531_v39 = vld [vmem:[%s3428_s7 + $0x58] sm:$0xff] }
  0x98   : >> { %v1004_v2 = vadd.f32 %v992_v40, %v957_v56  ;;  %v885_v10 = vadd.f32 %v862_v3, %v816_v48  ;;  %v1038_v12 = vsel %vm859_vm0, %v1036_v43, %v1037_v61  ;;  %v1168_v13 = vmul.f32 %v3466_v35, %v3458_v31 }
  0x99   : >> { %v1212_v14 = vrot.slane %v3505_v63, 1  ;;  %v1102_v16 = vsel %vm924_vm1, %v1100_v44, %v1101_v62  ;;  %v1276_v17 = vrot.slane %v1252_v0, 2  ;;  %v902_v18 = vmul.f32 %v3440_v21, %v798_v1 }
  0x9a   : >> { %v1060_v15 = vadd.f32 %v1036_v43, %v1004_v2  ;;  %v958_v26 = vadd.f32 %v927_v6, %v885_v10  ;;  %v886_v28 = vadd.f32 %v861_v57, %v817_v9  ;;  %v1078_v29 = vmul.f32 %v3520_v22, %v3449_v25  ;;  %v3559_v9 = vld [vmem:[%s3428_s7 + $0x60] sm:$0xff]  ;;  %v3562_v10 = vld [vmem:[%s3428_s7 + $0x68] sm:$0xff] }
  0x9b   : >> { %v1213_v27 = vsel %vm859_vm0, %v1211_v52, %v1212_v14  ;;  %v1277_v34 = vsel %vm924_vm1, %v1275_v53, %v1276_v17  ;;  %v928_v37 = vrot.slane %v902_v18, 2  ;;  %v994_v38 = vmul.f32 %v3488_v51, %v3443_v23 }
  0x9c   : >> { %v1132_v33 = vadd.f32 %v1100_v44, %v1060_v15  ;;  %v1005_v40 = vadd.f32 %v993_v59, %v958_v26  ;;  %v1103_v42 = vrot.slane %v1078_v29, 2  ;;  %v1253_v43 = vmul.f32 %v3342_v5, %v3531_v39 }
  0x9d   : >> { %v818_v46 = vmul.f32 %v2710_v32, %v3434_v19  ;;  %v929_v44 = vsel %vm924_vm1, %v926_v58, %v928_v37  ;;  %v845_v48 = vmul.f32 %v3455_v30, %v3437_v20  ;;  %v3542_v49 = vmul.f32 %v3455_v30, %v3440_v21 }
  0x9e   : >> { %v1179_v47 = vadd.f32 %v1167_v45, %v1132_v33  ;;  %v1061_v50 = vadd.f32 %v1038_v12, %v1005_v40  ;;  %v959_v54 = vadd.f32 %v929_v44, %v886_v28  ;;  %v1169_v55 = vmul.f32 %v3500_v60, %v3458_v31 }
  0x9f   : >> { %v1278_v56 = vrot.slane %v1253_v43, 2  ;;  %v1104_v45 = vsel %vm924_vm1, %v1101_v62, %v1103_v42  ;;  %v863_v57 = vrot.slane %v845_v48, 1  ;;  %v930_v58 = vrot.slane %v3542_v49, 2 }
  0xa0   : >> { %v1235_v32 = vadd.f32 %v1211_v52, %v1179_v47  ;;  %v1133_v59 = vadd.f32 %v1102_v16, %v1061_v50  ;;  %v1006_v0 = vadd.f32 %v994_v38, %v959_v54  ;;  %v995_v1 = vmul.f32 %v3474_v41, %v3443_v23 }
  0xa1   : >> { %v1022_v2 = vmul.f32 %v3466_v35, %v3446_v24  ;;  %v1279_v52 = vsel %vm924_vm1, %v1276_v17, %v1278_v56  ;;  %v887_v6 = vadd.f32 %v863_v57, %v818_v46  ;;  %v1079_v62 = vmul.f32 %v3466_v35, %v3449_v25 }
  0xa2   : >> { %v1307_v3 = vadd.f32 %v1275_v53, %v1235_v32  ;;  %v1180_v12 = vadd.f32 %v1168_v13, %v1133_v59  ;;  %v1062_v15 = vadd.f32 %v1037_v61, %v1006_v0  ;;  %v1170_v16 = vmul.f32 %v3559_v9, %v3458_v31 }
  0xa3   : >> { %v3568_v18 = vmul.f32 %v3562_v10, %v3469_v36  ;;  %v960_v26 = vadd.f32 %v930_v58, %v887_v6  ;;  %v1039_v28 = vrot.slane %v1022_v2, 1  ;;  %v1105_v37 = vrot.slane %v1079_v62, 2 }
  0xa4   : >> { %1321 = vst [vmem:[%s3549_s9 - $0x7] sm:$0x80] %v1307_v3  ;;  %v1346_v53 = vrot.slane %v1307_v3, 7  ;;  %v1388_v17 = vmul.f32 %v1307_v3, %v1307_v3  ;;  %v1236_v29 = vadd.f32 %v1213_v27, %v1180_v12  ;;  %v1134_v33 = vadd.f32 %v1104_v45, %v1062_v15 }
  0xa5   : >> { %v3573_v13 = vmul.f32 %v3342_v5, %v3562_v10  ;;  %v1007_v38 = vadd.f32 %v995_v1, %v960_v26  ;;  %v1214_v40 = vrot.slane %v3568_v18, 1  ;;  %v846_v42 = vmul.f32 %v3488_v51, %v3437_v20 }
  0xa6   : >> { %v1412_v61 = vrot.slane %v1388_v17, 7  ;;  %v1308_v43 = vadd.f32 %v1277_v34, %v1236_v29  ;;  %v1181_v46 = vadd.f32 %v1169_v55, %v1134_v33  ;;  %v819_v47 = vmul.f32 %v3455_v30, %v3434_v19 }
  0xa7   : >> { %v904_v27 = vmul.f32 %v3488_v51, %v3440_v21  ;;  %v1063_v44 = vadd.f32 %v1039_v28, %v1007_v38  ;;  %v1280_v48 = vrot.slane %v3573_v13, 2  ;;  %v864_v49 = vrot.slane %v846_v42, 1 }
  0xa8   : >> { %v3585_v50 = vmul.f32 %v3500_v60, %v3446_v24  ;;  %1322 = vst [vmem:[%s3549_s9 + $0x1] sm:$0xff] %v1308_v43  ;;  %v1347_v54 = vrot.slane %v1308_v43, 7  ;;  %v1389_v56 = vmul.f32 %v1308_v43, %v1308_v43  ;;  %v1237_v34 = vadd.f32 %v1212_v14, %v1181_v46 }
  0xa9   : >> { %v931_v55 = vrot.slane %v904_v27, 2  ;;  %v1135_v30 = vadd.f32 %v1105_v37, %v1063_v44  ;;  %v865_v32 = vsel %vm859_vm0, %v863_v57, %v864_v49  ;;  %v3594_v59 = vmul.f32 %v3500_v60, %v3449_v25 }
  0xaa   : >> { %v1040_v45 = vrot.slane %v3585_v50, 1  ;;  %v1413_v0 = vrot.slane %v1389_v56, 7  ;;  %v1309_v1 = vadd.f32 %v1279_v52, %v1237_v34  ;;  %v888_v2 = vadd.f32 %v865_v32, %v819_v47  ;;  %v3606_v52 = vld [vmem:[%s3428_s7 + $0x70] sm:$0xff] }
  0xab   : >> { %v996_v3 = vmul.f32 %v3466_v35, %v3443_v23  ;;  %v1348_v63 = vsel %vm1345_vm2, %v1346_v53, %v1347_v54  ;;  %v1182_v14 = vadd.f32 %v1170_v16, %v1135_v30  ;;  %v932_v6 = vsel %vm924_vm1, %v930_v58, %v931_v55 }
  0xac   : >> { %v1106_v57 = vrot.slane %v3594_v59, 2  ;;  %1323 = vst [vmem:[%s3549_s9 + $0x9] sm:$0x7f] %v1309_v1  ;;  %v1349_v62 = vrot.slane %v1309_v1, 7  ;;  %v1390_v12 = vmul.f32 %v1309_v1, %v1309_v1  ;;  %v961_v15 = vadd.f32 %v932_v6, %v888_v2  ;;  %v3637_v1 = vld [vmem:[%s3428_s7 + $0x78] sm:$0xff] }
  0xad   : >> { %v1041_v18 = vsel %vm859_vm0, %v1039_v28, %v1040_v45  ;;  %v1414_v17 = vsel %vm1345_vm2, %v1412_v61, %v1413_v0  ;;  %v1238_v26 = vadd.f32 %v1214_v40, %v1182_v14  ;;  %v3612_v58 = vmul.f32 %v3606_v52, %v3469_v36 }
  0xae   : >> { %v1107_v53 = vsel %vm924_vm1, %v1105_v37, %v1106_v57  ;;  %v1350_v16 = vsel %vm1345_vm2, %v1347_v54, %v1349_v62  ;;  %v1415_v29 = vrot.slane %v1390_v12, 7  ;;  %v1008_v33 = vadd.f32 %v996_v3, %v961_v15 }
  0xaf   : >> { %v1255_v13 = vmul.f32 %v3342_v5, %v3606_v52  ;;  %v1310_v28 = vadd.f32 %v1280_v48, %v1238_v26  ;;  %v1171_v38 = vmul.f32 %v3562_v10, %v3458_v31  ;;  %v1215_v61 = vrot.slane %v3612_v58, 1 }
  0xb0   : >> { %v820_v37 = vmul.f32 %v3488_v51, %v3434_v19  ;;  %v1416_v42 = vsel %vm1345_vm2, %v1413_v0, %v1415_v29  ;;  %v1064_v43 = vadd.f32 %v1041_v18, %v1008_v33  ;;  %v905_v47 = vmul.f32 %v3520_v22, %v3440_v21 }
  0xb1   : >> { %v1281_v46 = vrot.slane %v1255_v13, 2  ;;  %v1374_v27 = vadd.f32 %v1350_v16, %v1348_v63  ;;  %v3625_v44 = vadd.f32 %v1416_v42, %v1414_v17  ;;  %1324 = vst [vmem:[%s3549_s9 + $0x9] sm:$0x80] %v1310_v28  ;;  %v1351_v54 = vrot.slane %v1310_v28, 7  ;;  %v3658_v13 = vld [vmem:[%s3428_s7 + $0x88] sm:$0xff] }
  0xb2   : >> { %v1391_v56 = vmul.f32 %v1310_v28, %v1310_v28  ;;  %v1136_v34 = vadd.f32 %v1107_v53, %v1064_v43  ;;  %v889_v30 = vadd.f32 %v864_v49, %v820_v37  ;;  %v933_v32 = vrot.slane %v905_v47, 2 }
  0xb3   : >> { %v1216_v51 = vsel %vm859_vm0, %v1214_v40, %v1215_v61  ;;  %v1282_v59 = vsel %vm924_vm1, %v1280_v48, %v1281_v46  ;;  %v997_v0 = vmul.f32 %v3500_v60, %v3443_v23  ;;  %v1081_v22 = vmul.f32 %v3531_v39, %v3449_v25 }
  0xb4   : >> { %v1183_v2 = vadd.f32 %v1171_v38, %v1136_v34  ;;  %v934_v3 = vsel %vm924_vm1, %v931_v55, %v933_v32  ;;  %v1256_v49 = vmul.f32 %v3342_v5, %v3637_v1  ;;  %v821_v63 = vmul.f32 %v3474_v41, %v3434_v19 }
  0xb5   : >> { %v962_v40 = vadd.f32 %v934_v3, %v889_v30  ;;  %v1108_v48 = vrot.slane %v1081_v22, 2  ;;  %v847_v14 = vmul.f32 %v3466_v35, %v3437_v20  ;;  %v906_v6 = vmul.f32 %v3466_v35, %v3440_v21 }
  0xb6   : >> { %v1417_v62 = vrot.slane %v1391_v56, 7  ;;  %v1239_v12 = vadd.f32 %v1216_v51, %v1183_v2  ;;  %v1283_v15 = vrot.slane %v1256_v49, 2  ;;  %v1024_v55 = vmul.f32 %v3562_v10, %v3446_v24  ;;  %v3667_v56 = vld [vmem:[%s3428_s7 + $0x80] sm:$0xff] }
  0xb7   : >> { %v1009_v18 = vadd.f32 %v997_v0, %v962_v40  ;;  %v1172_v41 = vmul.f32 %v3606_v52, %v3458_v31  ;;  %v866_v17 = vrot.slane %v847_v14, 1  ;;  %v935_v26 = vrot.slane %v906_v6, 2 }
  0xb8   : >> { %v1311_v53 = vadd.f32 %v1282_v59, %v1239_v12  ;;  %v1109_v16 = vsel %vm924_vm1, %v1106_v57, %v1108_v48  ;;  %v998_v29 = vmul.f32 %v3559_v9, %v3443_v23  ;;  %v1082_v33 = vmul.f32 %v3562_v10, %v3449_v25 }
  0xb9   : >> { %v1065_v28 = vadd.f32 %v1040_v45, %v1009_v18  ;;  %v1284_v38 = vsel %vm924_vm1, %v1281_v46, %v1283_v15  ;;  %v890_v37 = vadd.f32 %v866_v17, %v821_v63  ;;  %v1199_v42 = vmul.f32 %v3658_v13, %v3469_v36 }
  0xba   : >> { %1325 = vst [vmem:[%s3549_s9 + $0x11] sm:$0xff] %v1311_v53  ;;  %v1352_v43 = vrot.slane %v1311_v53, 7  ;;  %v1392_v57 = vmul.f32 %v1311_v53, %v1311_v53  ;;  %v1042_v47 = vrot.slane %v1024_v55, 1  ;;  %v1257_v34 = vmul.f32 %v3342_v5, %v3658_v13 }
  0xbb   : >> { %v1137_v30 = vadd.f32 %v1109_v16, %v1065_v28  ;;  %v963_v32 = vadd.f32 %v935_v26, %v890_v37  ;;  %v1110_v51 = vrot.slane %v1082_v33, 2  ;;  %v1173_v50 = vmul.f32 %v3667_v56, %v3458_v31 }
  0xbc   : >> { %v1353_v45 = vsel %vm1345_vm2, %v1351_v54, %v1352_v43  ;;  %v1418_v46 = vrot.slane %v1392_v57, 7  ;;  %v1217_v59 = vrot.slane %v1199_v42, 1  ;;  %v848_v0 = vmul.f32 %v3500_v60, %v3437_v20 }
  0xbd   : >> { %v1184_v22 = vadd.f32 %v1172_v41, %v1137_v30  ;;  %v1010_v2 = vadd.f32 %v998_v29, %v963_v32  ;;  %v822_v3 = vmul.f32 %v3466_v35, %v3434_v19  ;;  %v907_v49 = vmul.f32 %v3500_v60, %v3440_v21 }
  0xbe   : >> { %v1375_v63 = vadd.f32 %v1374_v27, %v1353_v45  ;;  %v1285_v40 = vrot.slane %v1257_v34, 2  ;;  %v867_v48 = vrot.slane %v848_v0, 1  ;;  %v3682_v54 = vmul.f32 %v3606_v52, %v3446_v24 }
  0xbf   : >> { %v1419_v14 = vsel %vm1345_vm2, %v1417_v62, %v1418_v46  ;;  %v1240_v6 = vadd.f32 %v1215_v61, %v1184_v22  ;;  %v1066_v12 = vadd.f32 %v1042_v47, %v1010_v2  ;;  %v936_v15 = vrot.slane %v907_v49, 2  ;;  %v3697_v61 = vld [vmem:[%s3428_s7 + $0x90] sm:$0xff] }
  0xc0   : >> { %v868_v35 = vsel %vm859_vm0, %v866_v17, %v867_v48  ;;  %v999_v27 = vmul.f32 %v3562_v10, %v3443_v23  ;;  %v1043_v55 = vrot.slane %v3682_v54, 1  ;;  %v3693_v18 = vmul.f32 %v3606_v52, %v3449_v25 }
  0xc1   : >> { %v1312_v41 = vadd.f32 %v1284_v38, %v1240_v6  ;;  %v1138_v53 = vadd.f32 %v1110_v51, %v1066_v12  ;;  %v891_v62 = vadd.f32 %v868_v35, %v822_v3  ;;  %v937_v58 = vsel %vm924_vm1, %v935_v26, %v936_v15 }
  0xc2   : >> { %v1441_v16 = vadd.f32 %v3625_v44, %v1419_v14  ;;  %v1111_v17 = vrot.slane %v3693_v18, 2  ;;  %v3703_v29 = vmul.f32 %v3697_v61, %v3469_v36  ;;  %v1258_v33 = vmul.f32 %v3342_v5, %v3697_v61 }
  0xc3   : >> { %1326 = vst [vmem:[%s3549_s9 + $0x19] sm:$0x7f] %v1312_v41  ;;  %v1354_v28 = vrot.slane %v1312_v41, 7  ;;  %v1393_v38 = vmul.f32 %v1312_v41, %v1312_v41  ;;  %v1185_v37 = vadd.f32 %v1173_v50, %v1138_v53  ;;  %v964_v42 = vadd.f32 %v937_v58, %v891_v62 }
  0xc4   : >> { %v1044_v26 = vsel %vm859_vm0, %v1042_v47, %v1043_v55  ;;  %v1218_v44 = vrot.slane %v3703_v29, 1  ;;  %v1286_v57 = vrot.slane %v1258_v33, 2  ;;  %v823_v34 = vmul.f32 %v3500_v60, %v3434_v19 }
  0xc5   : >> { %v1355_v30 = vsel %vm1345_vm2, %v1352_v43, %v1354_v28  ;;  %v1420_v32 = vrot.slane %v1393_v38, 7  ;;  %v1241_v45 = vadd.f32 %v1217_v59, %v1185_v37  ;;  %v1011_v0 = vadd.f32 %v999_v27, %v964_v42  ;;  %v3749_v38 = vld [vmem:[%s3428_s7 + $0xa8] sm:$0xff] }
  0xc6   : >> { %v3715_v22 = vadd.f32 %v1375_v63, %v1355_v30  ;;  %v1112_v50 = vsel %vm924_vm1, %v1110_v51, %v1111_v17  ;;  %v1174_v47 = vmul.f32 %v3658_v13, %v3458_v31  ;;  %v908_v60 = vmul.f32 %v3531_v39, %v3440_v21  ;;  %v3735_v39 = vld [vmem:[%s3428_s7 + $0x98] sm:$0xff] }
  0xc7   : >> { %v1421_v2 = vsel %vm1345_vm2, %v1418_v46, %v1420_v32  ;;  %v1313_v3 = vadd.f32 %v1285_v40, %v1241_v45  ;;  %v1067_v49 = vadd.f32 %v1044_v26, %v1011_v0  ;;  %v1219_v43 = vsel %vm859_vm0, %v1217_v59, %v1218_v44  ;;  %v2740_v45 = vld [vmem:[%s3428_s7 + $0xa0] sm:$0xff] }
  0xc8   : >> { %v1287_v63 = vsel %vm924_vm1, %v1285_v40, %v1286_v57  ;;  %v892_v14 = vadd.f32 %v867_v48, %v823_v34  ;;  %v1084_v51 = vmul.f32 %v3637_v1, %v3449_v25  ;;  %v3729_v6 = vadd.f32 %v1441_v16, %v1421_v2 }
  0xc9   : >> { %1327 = vst [vmem:[%s3549_s9 + $0x19] sm:$0x80] %v1313_v3  ;;  %v1139_v12 = vadd.f32 %v1112_v50, %v1067_v49  ;;  %v938_v46 = vrot.slane %v908_v60, 2  ;;  %v1000_v35 = vmul.f32 %v3606_v52, %v3443_v23  ;;  %v1394_v27 = vmul.f32 %v1313_v3, %v1313_v3 }
  0xca   : >> { %v1259_v59 = vmul.f32 %v3342_v5, %v3735_v39  ;;  %v824_v40 = vmul.f32 %v3559_v9, %v3434_v19  ;;  %v849_v48 = vmul.f32 %v3562_v10, %v3437_v20  ;;  %v1113_v53 = vrot.slane %v1084_v51, 2 }
  0xcb   : >> { %v1186_v18 = vadd.f32 %v1174_v47, %v1139_v12  ;;  %v939_v41 = vsel %vm924_vm1, %v936_v15, %v938_v46  ;;  %v909_v62 = vmul.f32 %v3562_v10, %v3440_v21  ;;  %v1175_v16 = vmul.f32 %v3697_v61, %v3458_v31 }
  0xcc   : >> { %v965_v58 = vadd.f32 %v939_v41, %v892_v14  ;;  %v1288_v33 = vrot.slane %v1259_v59, 2  ;;  %v869_v28 = vrot.slane %v849_v48, 1  ;;  %v1356_v9 = vrot.slane %v1313_v3, 7 }
  0xcd   : >> { %v1242_v37 = vadd.f32 %v1219_v43, %v1186_v18  ;;  %v940_v42 = vrot.slane %v909_v62, 2  ;;  %v1026_v15 = vmul.f32 %v3658_v13, %v3446_v24  ;;  %v1001_v30 = vmul.f32 %v3667_v56, %v3443_v23 }
  0xce   : >> { %v1012_v26 = vadd.f32 %v1000_v35, %v965_v58  ;;  %v893_v34 = vadd.f32 %v869_v28, %v824_v40  ;;  %v1085_v32 = vmul.f32 %v3658_v13, %v3449_v25  ;;  %v1422_v0 = vrot.slane %v1394_v27, 7 }
  0xcf   : >> { %v1314_v50 = vadd.f32 %v1287_v63, %v1242_v37  ;;  %v1114_v47 = vsel %vm924_vm1, %v1111_v17, %v1113_v53  ;;  %v3761_v2 = vmul.f32 %v3749_v38, %v3469_v36  ;;  %v1289_v49 = vsel %vm924_vm1, %v1286_v57, %v1288_v33  ;;  %v2742_v33 = vld [vmem:[%s3428_s7 + $0xb0] sm:$0xff] }
  0xd0   : >> { %v1068_v3 = vadd.f32 %v1043_v55, %v1012_v26  ;;  %v966_v60 = vadd.f32 %v940_v42, %v893_v34  ;;  %v1045_v43 = vrot.slane %v1026_v15, 1  ;;  %v1115_v51 = vrot.slane %v1085_v32, 2 }
  0xd1   : >> { %1328 = vst [vmem:[%s3549_s9 + $0x21] sm:$0xff] %v1314_v50  ;;  %v1357_v56 = vrot.slane %v1314_v50, 7  ;;  %v1395_v14 = vmul.f32 %v1314_v50, %v1314_v50  ;;  %v1176_v12 = vmul.f32 %v2740_v45, %v3458_v31  ;;  %v3770_v46 = vmul.f32 %v3342_v5, %v3749_v38 }
  0xd2   : >> { %v1140_v63 = vadd.f32 %v1114_v47, %v1068_v3  ;;  %v1013_v17 = vadd.f32 %v1001_v30, %v966_v60  ;;  %v850_v54 = vmul.f32 %v3606_v52, %v3437_v20  ;;  %v1220_v57 = vrot.slane %v3761_v2, 1 }
  0xd3   : >> { %v1423_v55 = vrot.slane %v1395_v14, 7  ;;  %v825_v35 = vmul.f32 %v3562_v10, %v3434_v19  ;;  %v910_v27 = vmul.f32 %v3606_v52, %v3440_v21  ;;  %v1358_v59 = vsel %vm1345_vm2, %v1356_v9, %v1357_v56 }
  0xd4   : >> { %v1187_v40 = vadd.f32 %v1175_v16, %v1140_v63  ;;  %v1069_v48 = vadd.f32 %v1045_v43, %v1013_v17  ;;  %v870_v18 = vrot.slane %v850_v54, 1  ;;  %v1002_v53 = vmul.f32 %v3658_v13, %v3443_v23 }
  0xd5   : >> { %v941_v41 = vrot.slane %v910_v27, 2  ;;  %v1027_v62 = vmul.f32 %v3697_v61, %v3446_v24  ;;  %v1086_v58 = vmul.f32 %v3697_v61, %v3449_v25  ;;  %v1424_v10 = vsel %vm1345_vm2, %v1422_v0, %v1423_v55 }
  0xd6   : >> { %v1243_v9 = vadd.f32 %v1218_v44, %v1187_v40  ;;  %v1141_v16 = vadd.f32 %v1115_v51, %v1069_v48  ;;  %v871_v37 = vsel %vm859_vm0, %v869_v28, %v870_v18  ;;  %v1290_v45 = vrot.slane %v3770_v46, 2  ;;  %v2743_v48 = vld [vmem:[%s3428_s7 + $0xb8] sm:$0xff] }
  0xd7   : >> { %v894_v15 = vadd.f32 %v871_v37, %v825_v35  ;;  %v942_v26 = vsel %vm924_vm1, %v940_v42, %v941_v41  ;;  %v1046_v13 = vrot.slane %v1027_v62, 1  ;;  %v1116_v34 = vrot.slane %v1086_v58, 2 }
  0xd8   : >> { %v1315_v30 = vadd.f32 %v1289_v49, %v1243_v9  ;;  %v1188_v32 = vadd.f32 %v1176_v12, %v1141_v16  ;;  %v1202_v50 = vmul.f32 %v2742_v33, %v3469_v36  ;;  %v1377_v0 = vadd.f32 %v3715_v22, %v1358_v59 }
  0xd9   : >> { %v1443_v29 = vadd.f32 %v3729_v6, %v1424_v10  ;;  %v967_v47 = vadd.f32 %v942_v26, %v894_v15  ;;  %v1047_v44 = vsel %vm859_vm0, %v1045_v43, %v1046_v13  ;;  %v1261_v3 = vmul.f32 %v3342_v5, %v2742_v33 }
  0xda   : >> { %1329 = vst [vmem:[%s3549_s9 + $0x29] sm:$0x7f] %v1315_v30  ;;  %v1359_v28 = vrot.slane %v1315_v30, 7  ;;  %v1396_v2 = vmul.f32 %v1315_v30, %v1315_v30  ;;  %v1244_v42 = vadd.f32 %v1220_v57, %v1188_v32  ;;  %v1117_v60 = vsel %vm924_vm1, %v1115_v51, %v1116_v34 }
  0xdb   : >> { %v1014_v49 = vadd.f32 %v1002_v53, %v967_v47  ;;  %v826_v14 = vmul.f32 %v3606_v52, %v3434_v19  ;;  %v911_v22 = vmul.f32 %v3637_v1, %v3440_v21  ;;  %v1221_v63 = vrot.slane %v1202_v50, 1 }
  0xdc   : >> { %v1360_v6 = vsel %vm1345_vm2, %v1357_v56, %v1359_v28  ;;  %v1425_v43 = vrot.slane %v1396_v2, 7  ;;  %v1316_v12 = vadd.f32 %v1290_v45, %v1244_v42  ;;  %v1177_v54 = vmul.f32 %v3749_v38, %v3458_v31 }
  0xdd   : >> { %v1378_v17 = vadd.f32 %v1377_v0, %v1360_v6  ;;  %v1070_v46 = vadd.f32 %v1047_v44, %v1014_v49  ;;  %v895_v35 = vadd.f32 %v870_v18, %v826_v14  ;;  %v1291_v27 = vrot.slane %v1261_v3, 2 }
  0xde   : >> { %v1426_v51 = vsel %vm1345_vm2, %v1423_v55, %v1425_v43  ;;  %1330 = vst [vmem:[%s3549_s9 + $0x29] sm:$0x80] %v1316_v12  ;;  %v943_v52 = vrot.slane %v911_v22, 2  ;;  %v1003_v1 = vmul.f32 %v3697_v61, %v3443_v23  ;;  %v1087_v56 = vmul.f32 %v3735_v39, %v3449_v25 }
  0xdf   : >> { %v1444_v59 = vadd.f32 %v1443_v29, %v1426_v51  ;;  %v1142_v40 = vadd.f32 %v1117_v60, %v1070_v46  ;;  %v1222_v53 = vsel %vm859_vm0, %v1220_v57, %v1221_v63  ;;  %v1292_v58 = vsel %vm924_vm1, %v1290_v45, %v1291_v27 }
  0xe0   : >> { %v944_v62 = vsel %vm924_vm1, %v941_v41, %v943_v52  ;;  %v1118_v55 = vrot.slane %v1087_v56, 2  ;;  %v1262_v10 = vmul.f32 %v3342_v5, %v2743_v48  ;;  %v1397_v9 = vmul.f32 %v1316_v12, %v1316_v12 }
  0xe1   : >> { %v1189_v38 = vadd.f32 %v1177_v54, %v1142_v40  ;;  %v968_v18 = vadd.f32 %v944_v62, %v895_v35  ;;  %v1361_v15 = vrot.slane %v1316_v12, 7  ;;  %v1178_v57 = vmul.f32 %v2742_v33, %v3458_v31 }
  0xe2   : >> { %v1119_v61 = vsel %vm924_vm1, %v1116_v34, %v1118_v55  ;;  %v1293_v41 = vrot.slane %v1262_v10, 2  ;;  %v1427_v30 = vrot.slane %v1397_v9, 7 }
  0xe3   : >> { %v1245_v16 = vadd.f32 %v1222_v53, %v1189_v38  ;;  %v1015_v37 = vadd.f32 %v1003_v1, %v968_v18 }
  0xe4   : >> { %v1294_v28 = vsel %vm924_vm1, %v1291_v27, %v1293_v41 }
  0xe5   : >> { %v1317_v39 = vadd.f32 %v1292_v58, %v1245_v16  ;;  %v1071_v26 = vadd.f32 %v1046_v13, %v1015_v37 }
  0xe7   : >> { %1331 = vst [vmem:[%s3549_s9 + $0x31] sm:$0xff] %v1317_v39  ;;  %v1362_v32 = vrot.slane %v1317_v39, 7  ;;  %v1398_v50 = vmul.f32 %v1317_v39, %v1317_v39  ;;  %v1143_v0 = vadd.f32 %v1119_v61, %v1071_v26 }
  0xe9   : >> { %v1363_v45 = vsel %vm1345_vm2, %v1361_v15, %v1362_v32  ;;  %v1428_v29 = vrot.slane %v1398_v50, 7  ;;  %v1190_v47 = vadd.f32 %v1178_v57, %v1143_v0 }
  0xea   : >> { %v1379_v44 = vadd.f32 %v1378_v17, %v1363_v45 }
  0xeb   : >> { %v1429_v34 = vsel %vm1345_vm2, %v1427_v30, %v1428_v29  ;;  %v1246_v2 = vadd.f32 %v1221_v63, %v1190_v47 }
  0xec   : >> { %v1445_v13 = vadd.f32 %v1444_v59, %v1429_v34 }
  0xed   : >> { %v1318_v42 = vadd.f32 %v1294_v28, %v1246_v2 }
  0xef   : >> { %1332 = vst [vmem:[%s3549_s9 + $0x39] sm:$0x7f] %v1318_v42  ;;  %v1364_v33 = vrot.slane %v1318_v42, 7  ;;  %v1399_v3 = vmul.f32 %v1318_v42, %v1318_v42 }
  0xf1   : >> { %v1365_v49 = vsel %vm1345_vm2, %v1362_v32, %v1364_v33  ;;  %v1430_v60 = vrot.slane %v1399_v3, 7 }
  0xf2   : >> { %v1380_v14 = vadd.f32 %v1379_v44, %v1365_v49 }
  0xf3   : >> { %v1431_v22 = vsel %vm1345_vm2, %v1428_v29, %v1430_v60 }
  0xf4   : >> { %v1381_v6 = vrot.slane %v1380_v14, 4  ;;  %v1446_v43 = vadd.f32 %v1445_v13, %v1431_v22 }
  0xf6   : >> { %v1382_v12 = vadd.f32 %v1381_v6, %v1380_v14  ;;  %v1447_v17 = vrot.slane %v1446_v43, 4 }
  0xf8   : >> { %v1383_v46 = vrot.slane %v1382_v12, 2  ;;  %v1448_v54 = vadd.f32 %v1447_v17, %v1446_v43 }
  0xfa   : >> { %v1384_v35 = vadd.f32 %v1383_v46, %v1382_v12  ;;  %v1449_v51 = vrot.slane %v1448_v54, 2 }
  0xfc   : >> { %v1385_v63 = vrot.slane %v1384_v35, 1  ;;  %v1450_v27 = vadd.f32 %v1449_v51, %v1448_v54 }
  0xfe   : >> { %v1386_v52 = vadd.f32 %v1385_v63, %v1384_v35  ;;  %v1451_v59 = vrot.slane %v1450_v27, 1  ;;  %788 = sbr.rel (!%p786_p11) target bundleno = 136 (0x88), region = 239 }
 0x100   : >> { %v1387_v40 = vadd.f32 %v2995_v8, %v1386_v52   ;;  %v1452_v1 = vadd.f32 %v1451_v59, %v1450_v27 }
 0x102   : >> { %v1453_v56 = vadd.f32 %v2991_v7, %v1452_v1   ;;  %v4509_v8 = vmov %v1387_v40 }
 0x104   : >> { %v4508_v7 = vmov %v1453_v56 }
 0x105 LB: >> { %s2745_s11 = sshll.u32 %s3011_s10, 7  ;;  %s2798_s13 = sshll.u32 %s3011_s10, 6  ;;  %s3011_s10 = sphi %s3840_s10, %s1459_s10   ;;  %v3007_v40 = vphi %v1387_v40, %v4511_v40   ;;  %v3003_v56 = vphi %v1453_v56, %v4510_v56  }
 0x106   : >> { %s3852_s12 = scalar_lea.vmem [#allocation2], %s2745_s11  ;;  %s3957_s14 = scalar_lea.vmem %s3408_s30, %s2798_s13 [#allocation5] }
 0x107   : >> { %v2746_v4 = vld [vmem:[%s3852_s12 + $0x240] sm:$0xff]  ;;  %v2747_v7 = vld [vmem:[%s3852_s12 + $0x248] sm:$0xff]  ;;  %v2748_v61 = vld [vmem:[%s3852_s12 + $0x250] sm:$0xff]  ;;  %s1459_s10 = sadd.s32 1, %s3011_s10  }
 0x108   : >> { %v3857_v8 = vld [vmem:[%s3852_s12 + $0x260] sm:$0xff]  ;;  %v1486_v48 = vmul.f32 %v2746_v4, %v3434_v19  ;;  %v1514_v53 = vmul.f32 %v2747_v7, %v3437_v20  ;;  %v1571_v62 = vmul.f32 %v2747_v7, %v3440_v21  ;;  %v3863_v38 = vld [vmem:[%s3852_s12 + $0x268] sm:$0xff]  ;;  %v1487_v57 = vmul.f32 %v2747_v7, %v3434_v19  ;;  %v3894_v47 = vld [vmem:[%s3852_s12 + $0x270] sm:$0xff]  ;;  %p1456_p12 = scmp.ge.s32.totalorder %s1459_s10, 4  }
 0x109   : >> { %v1664_v18 = vmul.f32 %v3857_v8, %v3443_v23  ;;  %v3868_v55 = vld [vmem:[%s3852_s12 + $0x280] sm:$0xff]  ;;  %v3871_v58 = vld [vmem:[%s3852_s12 + $0x288] sm:$0xff]  ;;  %v1692_v10 = vmul.f32 %v3863_v38, %v3446_v24  ;;  %v1748_v9 = vmul.f32 %v3863_v38, %v3449_v25  ;;  %v1515_v50 = vmul.f32 %v2748_v61, %v3437_v20  ;;  %v3905_v13 = vld [vmem:[%s3852_s12 + $0x290] sm:$0xff]  ;;  %s4261_s27 = smov (%p1456_p12), 0  }
 0x10a   : >> { %v1840_v16 = vmul.f32 %v3868_v55, %v3458_v31  ;;  %v3881_v37 = vmul.f32 %v3871_v58, %v3469_v36  ;;  %v1531_v15 = vrot.slane %v1514_v53, 1  ;;  %v1596_v39 = vrot.slane %v1571_v62, 2  ;;  %v2749_v43 = vld [vmem:[%s3852_s12 + $0x258] sm:$0xff] }
 0x10b   : >> { %v3886_v26 = vmul.f32 %v3342_v5, %v3871_v58  ;;  %v1708_v41 = vrot.slane %v1692_v10, 1  ;;  %v1772_v30 = vrot.slane %v1748_v9, 2  ;;  %v1572_v29 = vmul.f32 %v2748_v61, %v3440_v21  ;;  %v3938_v10 = vld [vmem:[%s3852_s12 + $0x298] sm:$0xff] }
 0x10c   : >> { %v1884_v32 = vrot.slane %v3881_v37, 1  ;;  %v1555_v0 = vadd.f32 %v1531_v15, %v1486_v48  ;;  %v1665_v44 = vmul.f32 %v3863_v38, %v3443_v23  ;;  %v1532_v28 = vrot.slane %v1515_v50, 1  ;;  %v3928_v48 = vld [vmem:[%s3852_s12 + $0x278] sm:$0xff] }
 0x10d   : >> { %v1948_v45 = vrot.slane %v3886_v26, 2  ;;  %v3900_v34 = vmul.f32 %v3894_v47, %v3446_v24  ;;  %v1749_v2 = vmul.f32 %v3894_v47, %v3449_v25  ;;  %v1841_v42 = vmul.f32 %v3871_v58, %v3458_v31 }
 0x10e   : >> { %v1628_v33 = vadd.f32 %v1596_v39, %v1555_v0  ;;  %v1597_v3 = vrot.slane %v1572_v29, 2  ;;  %v3911_v49 = vmul.f32 %v3905_v13, %v3469_v36  ;;  %v1925_v60 = vmul.f32 %v3342_v5, %v3905_v13 }
 0x10f   : >> { %v1533_v14 = vsel %vm859_vm0, %v1531_v15, %v1532_v28  ;;  %v1709_v22 = vrot.slane %v3900_v34, 1  ;;  %v1773_v6 = vrot.slane %v1749_v2, 2  ;;  %v1488_v12 = vmul.f32 %v2748_v61, %v3434_v19 }
 0x110   : >> { %v1676_v17 = vadd.f32 %v1664_v18, %v1628_v33  ;;  %v1556_v46 = vadd.f32 %v1533_v14, %v1487_v57  ;;  %v1598_v54 = vsel %vm924_vm1, %v1596_v39, %v1597_v3  ;;  %v1885_v35 = vrot.slane %v3911_v49, 1 }
 0x111   : >> { %v1710_v51 = vsel %vm859_vm0, %v1708_v41, %v1709_v22  ;;  %v1774_v63 = vsel %vm924_vm1, %v1772_v30, %v1773_v6  ;;  %v1949_v27 = vrot.slane %v1925_v60, 2  ;;  %v1557_v52 = vadd.f32 %v1532_v28, %v1488_v12 }
 0x112   : >> { %v1732_v59 = vadd.f32 %v1708_v41, %v1676_v17  ;;  %v1629_v1 = vadd.f32 %v1598_v54, %v1556_v46  ;;  %v1886_v4 = vsel %vm859_vm0, %v1884_v32, %v1885_v35  ;;  %v1573_v7 = vmul.f32 %v2749_v43, %v3440_v21  ;;  %v3966_v46 = vld [vmem:[%s3852_s12 + $0x2a0] sm:$0xff] }
 0x113   : >> { %v1950_v53 = vsel %vm924_vm1, %v1948_v45, %v1949_v27  ;;  %v1666_v62 = vmul.f32 %v3894_v47, %v3443_v23  ;;  %v1750_v18 = vmul.f32 %v3928_v48, %v3449_v25  ;;  %v1842_v9 = vmul.f32 %v3905_v13, %v3458_v31 }
 0x114   : >> { %v1804_v37 = vadd.f32 %v1772_v30, %v1732_v59  ;;  %v1677_v61 = vadd.f32 %v1665_v44, %v1629_v1  ;;  %v1599_v15 = vrot.slane %v1573_v7, 2  ;;  %v1926_v39 = vmul.f32 %v3342_v5, %v3938_v10 }
 0x115   : >> { %v1775_v57 = vrot.slane %v1750_v18, 2  ;;  %v1489_v41 = vmul.f32 %v3857_v8, %v3434_v19  ;;  %v1516_v50 = vmul.f32 %v3863_v38, %v3437_v20  ;;  %v1574_v0 = vmul.f32 %v3863_v38, %v3440_v21 }
 0x116   : >> { %v1852_v29 = vadd.f32 %v1840_v16, %v1804_v37  ;;  %v1733_v28 = vadd.f32 %v1710_v51, %v1677_v61  ;;  %v1600_v30 = vsel %vm924_vm1, %v1597_v3, %v1599_v15  ;;  %v1951_v44 = vrot.slane %v1926_v39, 2 }
 0x117   : >> { %v1630_v34 = vadd.f32 %v1600_v30, %v1557_v52  ;;  %v1776_v2 = vsel %vm924_vm1, %v1773_v6, %v1775_v57  ;;  %v1534_v33 = vrot.slane %v1516_v50, 1  ;;  %v1601_v8 = vrot.slane %v1574_v0, 2 }
 0x118   : >> { %v1908_v60 = vadd.f32 %v1884_v32, %v1852_v29  ;;  %v1805_v14 = vadd.f32 %v1774_v63, %v1733_v28  ;;  %v1952_v43 = vsel %vm924_vm1, %v1949_v27, %v1951_v44  ;;  %v1667_v12 = vmul.f32 %v3868_v55, %v3443_v23  ;;  %v3969_v32 = vld [vmem:[%s3852_s12 + $0x2a8] sm:$0xff] }
 0x119   : >> { %v1678_v16 = vadd.f32 %v1666_v62, %v1630_v34  ;;  %v1558_v17 = vadd.f32 %v1534_v33, %v1489_v41  ;;  %v1694_v3 = vmul.f32 %v3871_v58, %v3446_v24  ;;  %v3963_v6 = vmul.f32 %v3871_v58, %v3449_v25 }
 0x11a   : >> { %v1980_v54 = vadd.f32 %v1948_v45, %v1908_v60  ;;  %v1853_v51 = vadd.f32 %v1841_v42, %v1805_v14  ;;  %v1843_v63 = vmul.f32 %v3966_v46, %v3458_v31  ;;  %v3977_v27 = vmul.f32 %v3969_v32, %v3469_v36 }
 0x11b   : >> { %v1734_v52 = vadd.f32 %v1709_v22, %v1678_v16  ;;  %v1631_v59 = vadd.f32 %v1601_v8, %v1558_v17  ;;  %v1711_v1 = vrot.slane %v1694_v3, 1  ;;  %v1777_v7 = vrot.slane %v3963_v6, 2  ;;  %v4009_v6 = vld [vmem:[%s3852_s12 + $0x2b0] sm:$0xff] }
 0x11c   : >> { %2799 = vst [vmem:[%s3957_s14 + $0xf9] sm:$0x80] %v1980_v54  ;;  %v2020_v62 = vrot.slane %v1980_v54, 7  ;;  %v2062_v18 = vmul.f32 %v1980_v54, %v1980_v54  ;;  %v1909_v37 = vadd.f32 %v1886_v4, %v1853_v51  ;;  %v1887_v26 = vrot.slane %v3977_v27, 1 }
 0x11d   : >> { %v1806_v45 = vadd.f32 %v1776_v2, %v1734_v52  ;;  %v1679_v42 = vadd.f32 %v1667_v12, %v1631_v59  ;;  %v1927_v61 = vmul.f32 %v3342_v5, %v3969_v32  ;;  %v1490_v15 = vmul.f32 %v3863_v38, %v3434_v19 }
 0x11e   : >> { %v2086_v22 = vrot.slane %v2062_v18, 7  ;;  %v1981_v39 = vadd.f32 %v1950_v53, %v1909_v37  ;;  %v1517_v57 = vmul.f32 %v3894_v47, %v3437_v20  ;;  %v3990_v41 = vmul.f32 %v3894_v47, %v3440_v21 }
 0x11f   : >> { %v1854_v4 = vadd.f32 %v1842_v9, %v1806_v45  ;;  %v1735_v50 = vadd.f32 %v1711_v1, %v1679_v42  ;;  %v1953_v0 = vrot.slane %v1927_v61, 2  ;;  %v1668_v29 = vmul.f32 %v3871_v58, %v3443_v23 }
 0x120   : >> { %2800 = vst [vmem:[%s3957_s14 + $0x101] sm:$0xff] %v1981_v39  ;;  %v2021_v28 = vrot.slane %v1981_v39, 7  ;;  %v2063_v30 = vmul.f32 %v1981_v39, %v1981_v39  ;;  %v1535_v38 = vrot.slane %v1517_v57, 1  ;;  %v1602_v53 = vrot.slane %v3990_v41, 2 }
 0x121   : >> { %v1910_v44 = vadd.f32 %v1885_v35, %v1854_v4  ;;  %v1807_v34 = vadd.f32 %v1777_v7, %v1735_v50  ;;  %v4000_v9 = vmul.f32 %v3905_v13, %v3446_v24  ;;  %v1752_v2 = vmul.f32 %v3905_v13, %v3449_v25 }
 0x122   : >> { %v2022_v60 = vsel %vm1345_vm2, %v2020_v62, %v2021_v28  ;;  %v2087_v14 = vrot.slane %v2063_v30, 7  ;;  %v1536_v12 = vsel %vm859_vm0, %v1534_v33, %v1535_v38  ;;  %v1603_v16 = vsel %vm924_vm1, %v1601_v8, %v1602_v53 }
 0x123   : >> { %v1982_v17 = vadd.f32 %v1952_v43, %v1910_v44  ;;  %v1855_v3 = vadd.f32 %v1843_v63, %v1807_v34  ;;  %v1559_v49 = vadd.f32 %v1536_v12, %v1490_v15  ;;  %v1712_v35 = vrot.slane %v4000_v9, 1 }
 0x124   : >> { %v1778_v54 = vrot.slane %v1752_v2, 2  ;;  %v4013_v51 = vmul.f32 %v4009_v6, %v3469_v36  ;;  %v2088_v8 = vsel %vm1345_vm2, %v2086_v22, %v2087_v14  ;;  %v1928_v62 = vmul.f32 %v3342_v5, %v4009_v6  ;;  %v4050_v2 = vld [vmem:[%s3852_s12 + $0x2b8] sm:$0xff] }
 0x125   : >> { %2801 = vst [vmem:[%s3957_s14 + $0x109] sm:$0x7f] %v1982_v17  ;;  %v2023_v27 = vrot.slane %v1982_v17, 7  ;;  %v2064_v52 = vmul.f32 %v1982_v17, %v1982_v17  ;;  %v1911_v59 = vadd.f32 %v1887_v26, %v1855_v3  ;;  %v1632_v33 = vadd.f32 %v1603_v16, %v1559_v49 }
 0x126   : >> { %v1713_v43 = vsel %vm859_vm0, %v1711_v1, %v1712_v35  ;;  %v1888_v63 = vrot.slane %v4013_v51, 1  ;;  %v1779_v15 = vsel %vm924_vm1, %v1777_v7, %v1778_v54  ;;  %v1954_v22 = vrot.slane %v1928_v62, 2 }
 0x127   : >> { %v2024_v18 = vsel %vm1345_vm2, %v2021_v28, %v2023_v27  ;;  %v2089_v37 = vrot.slane %v2064_v52, 7  ;;  %v4024_v45 = vadd.f32 %v1953_v0, %v1911_v59  ;;  %v1680_v42 = vadd.f32 %v1668_v29, %v1632_v33 }
 0x128   : >> { %v4026_v61 = vadd.f32 %v2024_v18, %v2022_v60  ;;  %v1491_v1 = vmul.f32 %v3894_v47, %v3434_v19  ;;  %v1844_v41 = vmul.f32 %v3969_v32, %v3458_v31  ;;  %v1889_v4 = vsel %vm859_vm0, %v1887_v26, %v1888_v63 }
 0x129   : >> { %v2090_v39 = vsel %vm1345_vm2, %v2087_v14, %v2089_v37  ;;  %2802 = vst [vmem:[%s3957_s14 + $0x109] sm:$0x80] %v4024_v45  ;;  %v1736_v57 = vadd.f32 %v1713_v43, %v1680_v42  ;;  %v2025_v7 = vrot.slane %v4024_v45, 7  ;;  %v2065_v29 = vmul.f32 %v4024_v45, %v4024_v45 }
 0x12a   : >> { %v4039_v50 = vadd.f32 %v2090_v39, %v2088_v8  ;;  %v1576_v47 = vmul.f32 %v3928_v48, %v3440_v21  ;;  %v1955_v30 = vsel %vm924_vm1, %v1953_v0, %v1954_v22  ;;  %v1560_v44 = vadd.f32 %v1535_v38, %v1491_v1  ;;  %v4079_v1 = vld [vmem:[%s3852_s12 + $0x2c8] sm:$0xff] }
 0x12b   : >> { %v1808_v28 = vadd.f32 %v1779_v15, %v1736_v57  ;;  %v1753_v34 = vmul.f32 %v3938_v10, %v3449_v25  ;;  %v1669_v60 = vmul.f32 %v3905_v13, %v3443_v23  ;;  %v1929_v14 = vmul.f32 %v3342_v5, %v4050_v2  ;;  %v4076_v15 = vld [vmem:[%s3852_s12 + $0x2c0] sm:$0xff] }
 0x12c   : >> { %v1604_v26 = vrot.slane %v1576_v47, 2  ;;  %v1492_v12 = vmul.f32 %v3868_v55, %v3434_v19  ;;  %v1518_v0 = vmul.f32 %v3871_v58, %v3437_v20  ;;  %v1577_v38 = vmul.f32 %v3871_v58, %v3440_v21 }
 0x12d   : >> { %v1856_v48 = vadd.f32 %v1844_v41, %v1808_v28  ;;  %v1780_v16 = vrot.slane %v1753_v34, 2  ;;  %v2091_v17 = vrot.slane %v2065_v29, 7  ;;  %v1956_v49 = vrot.slane %v1929_v14, 2 }
 0x12e   : >> { %v1605_v3 = vsel %vm924_vm1, %v1602_v53, %v1604_v26  ;;  %v1696_v27 = vmul.f32 %v3969_v32, %v3446_v24  ;;  %v1845_v55 = vmul.f32 %v4009_v6, %v3458_v31  ;;  %v1537_v33 = vrot.slane %v1518_v0, 1 }
 0x12f   : >> { %v1912_v52 = vadd.f32 %v1889_v4, %v1856_v48  ;;  %v1633_v59 = vadd.f32 %v1605_v3, %v1560_v44  ;;  %v1781_v8 = vsel %vm924_vm1, %v1778_v54, %v1780_v16  ;;  %v1606_v43 = vrot.slane %v1577_v38, 2 }
 0x130   : >> { %v1670_v62 = vmul.f32 %v3966_v46, %v3443_v23  ;;  %v1754_v53 = vmul.f32 %v3969_v32, %v3449_v25  ;;  %v1957_v45 = vsel %vm924_vm1, %v1954_v22, %v1956_v49  ;;  %v1561_v42 = vadd.f32 %v1537_v33, %v1492_v12 }
 0x131   : >> { %v4072_v18 = vadd.f32 %v1955_v30, %v1912_v52  ;;  %v1681_v37 = vadd.f32 %v1669_v60, %v1633_v59  ;;  %v1714_v39 = vrot.slane %v1696_v27, 1  ;;  %v1846_v54 = vmul.f32 %v4076_v15, %v3458_v31 }
 0x132   : >> { %v1872_v57 = vmul.f32 %v4079_v1, %v3469_v36  ;;  %v1930_v41 = vmul.f32 %v3342_v5, %v4079_v1  ;;  %v1634_v47 = vadd.f32 %v1606_v43, %v1561_v42  ;;  %v1782_v28 = vrot.slane %v1754_v53, 2  ;;  %v4116_v53 = vld [vmem:[%s3852_s12 + $0x2d0] sm:$0xff] }
 0x133   : >> { %2803 = vst [vmem:[%s3957_s14 + $0x111] sm:$0xff] %v4072_v18  ;;  %v2026_v4 = vrot.slane %v4072_v18, 7  ;;  %v2066_v22 = vmul.f32 %v4072_v18, %v4072_v18  ;;  %v1737_v29 = vadd.f32 %v1712_v35, %v1681_v37  ;;  %v1493_v30 = vmul.f32 %v3871_v58, %v3434_v19 }
 0x134   : >> { %v1519_v44 = vmul.f32 %v3905_v13, %v3437_v20  ;;  %v1578_v34 = vmul.f32 %v3905_v13, %v3440_v21  ;;  %v1682_v14 = vadd.f32 %v1670_v62, %v1634_v47  ;;  %v1890_v12 = vrot.slane %v1872_v57, 1 }
 0x135   : >> { %v2092_v26 = vrot.slane %v2066_v22, 7  ;;  %v1809_v60 = vadd.f32 %v1781_v8, %v1737_v29  ;;  %v2027_v48 = vsel %vm1345_vm2, %v2025_v7, %v2026_v4  ;;  %v1958_v9 = vrot.slane %v1930_v41, 2 }
 0x136   : >> { %v1538_v35 = vrot.slane %v1519_v44, 1  ;;  %v1607_v16 = vrot.slane %v1578_v34, 2  ;;  %v1738_v38 = vadd.f32 %v1714_v39, %v1682_v14  ;;  %v1671_v58 = vmul.f32 %v3969_v32, %v3443_v23 }
 0x137   : >> { %v1857_v0 = vadd.f32 %v1845_v55, %v1809_v60  ;;  %v4105_v3 = vmul.f32 %v4009_v6, %v3446_v24  ;;  %v2093_v49 = vsel %vm1345_vm2, %v2091_v17, %v2092_v26  ;;  %v1755_v7 = vmul.f32 %v4009_v6, %v3449_v25 }
 0x138   : >> { %v1539_v27 = vsel %vm859_vm0, %v1537_v33, %v1538_v35  ;;  %v1608_v52 = vsel %vm924_vm1, %v1606_v43, %v1607_v16  ;;  %v1810_v55 = vadd.f32 %v1782_v28, %v1738_v38  ;;  %v2049_v18 = vadd.f32 %v4026_v61, %v2027_v48 }
 0x139   : >> { %v1913_v59 = vadd.f32 %v1888_v63, %v1857_v0  ;;  %v1562_v8 = vadd.f32 %v1539_v27, %v1493_v30  ;;  %v1715_v62 = vrot.slane %v4105_v3, 1  ;;  %v1783_v17 = vrot.slane %v1755_v7, 2  ;;  %v4151_v27 = vld [vmem:[%s3852_s12 + $0x2d8] sm:$0xff] }
 0x13a   : >> { %v4121_v33 = vmul.f32 %v4116_v53, %v3469_v36  ;;  %v1931_v43 = vmul.f32 %v3342_v5, %v4116_v53  ;;  %v2115_v51 = vadd.f32 %v4039_v50, %v2093_v49  ;;  %v1858_v37 = vadd.f32 %v1846_v54, %v1810_v55 }
 0x13b   : >> { %v1985_v63 = vadd.f32 %v1957_v45, %v1913_v59  ;;  %v1635_v42 = vadd.f32 %v1608_v52, %v1562_v8  ;;  %v1716_v57 = vsel %vm859_vm0, %v1714_v39, %v1715_v62  ;;  %v1494_v61 = vmul.f32 %v3905_v13, %v3434_v19 }
 0x13c   : >> { %v1891_v41 = vrot.slane %v4121_v33, 1  ;;  %v1959_v22 = vrot.slane %v1931_v43, 2  ;;  %v1914_v30 = vadd.f32 %v1890_v12, %v1858_v37  ;;  %v1784_v34 = vsel %vm924_vm1, %v1782_v28, %v1783_v17 }
 0x13d   : >> { %2804 = vst [vmem:[%s3957_s14 + $0x119] sm:$0x7f] %v1985_v63  ;;  %v2028_v29 = vrot.slane %v1985_v63, 7  ;;  %v2067_v47 = vmul.f32 %v1985_v63, %v1985_v63  ;;  %v1683_v44 = vadd.f32 %v1671_v58, %v1635_v42  ;;  %v1847_v50 = vmul.f32 %v4079_v1, %v3458_v31  ;;  %v2794_v42 = vld [vmem:[%s3852_s12 + $0x2e0] sm:$0xff] }
 0x13e   : >> { %v1563_v45 = vadd.f32 %v1538_v35, %v1494_v61  ;;  %v1579_v39 = vmul.f32 %v3938_v10, %v3440_v21  ;;  %v1986_v13 = vadd.f32 %v1958_v9, %v1914_v30  ;;  %v1892_v48 = vsel %vm859_vm0, %v1890_v12, %v1891_v41 }
 0x13f   : >> { %v2029_v54 = vsel %vm1345_vm2, %v2026_v4, %v2028_v29  ;;  %v2094_v60 = vrot.slane %v2067_v47, 7  ;;  %v1739_v14 = vadd.f32 %v1716_v57, %v1683_v44  ;;  %v1960_v0 = vsel %vm924_vm1, %v1958_v9, %v1959_v22  ;;  %v4166_v57 = vld [vmem:[%s3852_s12 + $0x2e8] sm:$0xff] }
 0x140   : >> { %v1609_v28 = vrot.slane %v1579_v39, 2  ;;  %v1756_v38 = vmul.f32 %v4050_v2, %v3449_v25  ;;  %v4143_v35 = vadd.f32 %v2049_v18, %v2029_v54  ;;  %2805 = vst [vmem:[%s3957_s14 + $0x119] sm:$0x80] %v1986_v13  ;;  %v1672_v58 = vmul.f32 %v4009_v6, %v3443_v23 }
 0x141   : >> { %v2095_v10 = vsel %vm1345_vm2, %v2092_v26, %v2094_v60  ;;  %v1811_v4 = vadd.f32 %v1784_v34, %v1739_v14  ;;  %v2030_v3 = vrot.slane %v1986_v13, 7  ;;  %v2068_v49 = vmul.f32 %v1986_v13, %v1986_v13 }
 0x142   : >> { %v1610_v12 = vsel %vm924_vm1, %v1607_v16, %v1609_v28  ;;  %v1785_v9 = vrot.slane %v1756_v38, 2  ;;  %v2116_v52 = vadd.f32 %v2115_v51, %v2095_v10  ;;  %v1932_v26 = vmul.f32 %v3342_v5, %v4151_v27 }
 0x143   : >> { %v1859_v7 = vadd.f32 %v1847_v50, %v1811_v4  ;;  %v1636_v59 = vadd.f32 %v1610_v12, %v1563_v45  ;;  %v1848_v55 = vmul.f32 %v4116_v53, %v3458_v31  ;;  %v1495_v8 = vmul.f32 %v3966_v46, %v3434_v19 }
 0x144   : >> { %v1520_v18 = vmul.f32 %v3969_v32, %v3437_v20  ;;  %v1580_v16 = vmul.f32 %v3969_v32, %v3440_v21  ;;  %v1786_v51 = vsel %vm924_vm1, %v1783_v17, %v1785_v9  ;;  %v1961_v37 = vrot.slane %v1932_v26, 2 }
 0x145   : >> { %v1915_v43 = vadd.f32 %v1892_v48, %v1859_v7  ;;  %v1684_v63 = vadd.f32 %v1672_v58, %v1636_v59  ;;  %v1698_v46 = vmul.f32 %v4079_v1, %v3446_v24  ;;  %v1757_v47 = vmul.f32 %v4079_v1, %v3449_v25 }
 0x146   : >> { %v1540_v61 = vrot.slane %v1520_v18, 1  ;;  %v1611_v29 = vrot.slane %v1580_v16, 2  ;;  %v2096_v30 = vrot.slane %v2068_v49, 7  ;;  %v1673_v50 = vmul.f32 %v4076_v15, %v3443_v23 }
 0x147   : >> { %v1987_v44 = vadd.f32 %v1960_v0, %v1915_v43  ;;  %v1740_v34 = vadd.f32 %v1715_v62, %v1684_v63  ;;  %v1962_v17 = vsel %vm924_vm1, %v1959_v22, %v1961_v37  ;;  %v1849_v39 = vmul.f32 %v2794_v42, %v3458_v31 }
 0x148   : >> { %v1564_v45 = vadd.f32 %v1540_v61, %v1495_v8  ;;  %v4178_v54 = vmul.f32 %v4166_v57, %v3469_v36  ;;  %v4183_v48 = vmul.f32 %v3342_v5, %v4166_v57  ;;  %v1717_v15 = vrot.slane %v1698_v46, 1 }
 0x149   : >> { %2806 = vst [vmem:[%s3957_s14 + $0x121] sm:$0xff] %v1987_v44  ;;  %v2031_v60 = vrot.slane %v1987_v44, 7  ;;  %v2069_v13 = vmul.f32 %v1987_v44, %v1987_v44  ;;  %v1812_v14 = vadd.f32 %v1786_v51, %v1740_v34  ;;  %v1787_v0 = vrot.slane %v1757_v47, 2 }
 0x14a   : >> { %v1637_v62 = vadd.f32 %v1611_v29, %v1564_v45  ;;  %v1521_v22 = vmul.f32 %v4009_v6, %v3437_v20  ;;  %v1893_v10 = vrot.slane %v4178_v54, 1  ;;  %v1496_v4 = vmul.f32 %v3969_v32, %v3434_v19  ;;  %v2796_v32 = vld [vmem:[%s3852_s12 + $0x2f0] sm:$0xff] }
 0x14b   : >> { %v2097_v28 = vrot.slane %v2069_v13, 7  ;;  %v1860_v38 = vadd.f32 %v1848_v55, %v1812_v14  ;;  %v2032_v58 = vsel %vm1345_vm2, %v2030_v3, %v2031_v60  ;;  %v1581_v9 = vmul.f32 %v4009_v6, %v3440_v21 }
 0x14c   : >> { %v1685_v49 = vadd.f32 %v1673_v50, %v1637_v62  ;;  %v1541_v12 = vrot.slane %v1521_v22, 1  ;;  %v1963_v26 = vrot.slane %v4183_v48, 2  ;;  %v4199_v55 = vmul.f32 %v4116_v53, %v3446_v24 }
 0x14d   : >> { %v2098_v7 = vsel %vm1345_vm2, %v2096_v30, %v2097_v28  ;;  %v1916_v59 = vadd.f32 %v1891_v41, %v1860_v38  ;;  %v1612_v18 = vrot.slane %v1581_v9, 2  ;;  %v1674_v16 = vmul.f32 %v4079_v1, %v3443_v23 }
 0x14e   : >> { %v1741_v8 = vadd.f32 %v1717_v15, %v1685_v49  ;;  %v1542_v3 = vsel %vm859_vm0, %v1540_v61, %v1541_v12  ;;  %v1718_v33 = vrot.slane %v4199_v55, 1  ;;  %v1758_v41 = vmul.f32 %v4116_v53, %v3449_v25 }
 0x14f   : >> { %v1988_v43 = vadd.f32 %v1962_v17, %v1916_v59  ;;  %v1565_v63 = vadd.f32 %v1542_v3, %v1496_v4  ;;  %v2051_v51 = vadd.f32 %v4143_v35, %v2032_v58  ;;  %v1613_v42 = vsel %vm924_vm1, %v1611_v29, %v1612_v18 }
 0x150   : >> { %v1813_v37 = vadd.f32 %v1787_v0, %v1741_v8  ;;  %v1875_v46 = vmul.f32 %v2796_v32, %v3469_v36  ;;  %v2117_v47 = vadd.f32 %v2116_v52, %v2098_v7  ;;  %v1719_v34 = vsel %vm859_vm0, %v1717_v15, %v1718_v33  ;;  %v2797_v7 = vld [vmem:[%s3852_s12 + $0x2f8] sm:$0xff] }
 0x151   : >> { %2807 = vst [vmem:[%s3957_s14 + $0x129] sm:$0x7f] %v1988_v43  ;;  %v2033_v61 = vrot.slane %v1988_v43, 7  ;;  %v2070_v30 = vmul.f32 %v1988_v43, %v1988_v43  ;;  %v1638_v44 = vadd.f32 %v1613_v42, %v1565_v63  ;;  %v1788_v50 = vrot.slane %v1758_v41, 2 }
 0x152   : >> { %v1861_v1 = vadd.f32 %v1849_v39, %v1813_v37  ;;  %v1934_v17 = vmul.f32 %v3342_v5, %v2796_v32  ;;  %v1497_v29 = vmul.f32 %v4009_v6, %v3434_v19  ;;  %v1894_v48 = vrot.slane %v1875_v46, 1 }
 0x153   : >> { %v2034_v45 = vsel %vm1345_vm2, %v2031_v60, %v2033_v61  ;;  %v2099_v54 = vrot.slane %v2070_v30, 7  ;;  %v1686_v35 = vadd.f32 %v1674_v16, %v1638_v44  ;;  %v1789_v14 = vsel %vm924_vm1, %v1787_v0, %v1788_v50 }
 0x154   : >> { %v2052_v13 = vadd.f32 %v2051_v51, %v2034_v45  ;;  %v1917_v52 = vadd.f32 %v1893_v10, %v1861_v1  ;;  %v1850_v15 = vmul.f32 %v4166_v57, %v3458_v31  ;;  %v1964_v38 = vrot.slane %v1934_v17, 2 }
 0x155   : >> { %v2100_v39 = vsel %vm1345_vm2, %v2097_v28, %v2099_v54  ;;  %v1742_v62 = vadd.f32 %v1719_v34, %v1686_v35  ;;  %v1582_v4 = vmul.f32 %v4050_v2, %v3440_v21  ;;  %v1566_v6 = vadd.f32 %v1541_v12, %v1497_v29 }
 0x156   : >> { %v2118_v22 = vadd.f32 %v2117_v47, %v2100_v39  ;;  %v1989_v60 = vadd.f32 %v1963_v26, %v1917_v52  ;;  %v1759_v49 = vmul.f32 %v4151_v27, %v3449_v25  ;;  %v1895_v0 = vsel %vm859_vm0, %v1893_v10, %v1894_v48 }
 0x157   : >> { %v1814_v58 = vadd.f32 %v1789_v14, %v1742_v62  ;;  %v1614_v9 = vrot.slane %v1582_v4, 2  ;;  %v1675_v57 = vmul.f32 %v4116_v53, %v3443_v23  ;;  %v1965_v59 = vsel %vm924_vm1, %v1963_v26, %v1964_v38 }
 0x158   : >> { %2808 = vst [vmem:[%s3957_s14 + $0x129] sm:$0x80] %v1989_v60  ;;  %v1790_v2 = vrot.slane %v1759_v49, 2  ;;  %v2071_v8 = vmul.f32 %v1989_v60, %v1989_v60  ;;  %v1935_v27 = vmul.f32 %v3342_v5, %v2797_v7  ;;  %v2035_v16 = vrot.slane %v1989_v60, 7 }
 0x159   : >> { %v1862_v28 = vadd.f32 %v1850_v15, %v1814_v58  ;;  %v1615_v55 = vsel %vm924_vm1, %v1612_v18, %v1614_v9  ;;  %v1851_v41 = vmul.f32 %v2796_v32, %v3458_v31 }
 0x15a   : >> { %v1639_v3 = vadd.f32 %v1615_v55, %v1566_v6  ;;  %v1791_v63 = vsel %vm924_vm1, %v1788_v50, %v1790_v2  ;;  %v2101_v51 = vrot.slane %v2071_v8, 7  ;;  %v1966_v18 = vrot.slane %v1935_v27, 2  ;;  %v2135_v8 = vld [vmem:[%s563_s28] sm:$0x1] (%p1456_p12) }
 0x15b   : >> { %v1918_v12 = vadd.f32 %v1895_v0, %v1862_v28 }
 0x15c   : >> { %v1687_v10 = vadd.f32 %v1675_v57, %v1639_v3  ;;  %v1967_v34 = vsel %vm924_vm1, %v1964_v38, %v1966_v18 }
 0x15d   : >> { %v1990_v43 = vadd.f32 %v1965_v59, %v1918_v12  ;;  %v2134_v59 = vld [vmem:[%s560_s25] sm:$0x1] (%p1456_p12) }
 0x15e   : >> { %v1743_v37 = vadd.f32 %v1718_v33, %v1687_v10 }
 0x15f   : >> { %2809 = vst [vmem:[%s3957_s14 + $0x131] sm:$0xff] %v1990_v43  ;;  %v2036_v53 = vrot.slane %v1990_v43, 7  ;;  %v2072_v26 = vmul.f32 %v1990_v43, %v1990_v43 }
 0x160   : >> { %v1815_v47 = vadd.f32 %v1791_v63, %v1743_v37 }
 0x161   : >> { %v2037_v42 = vsel %vm1345_vm2, %v2035_v16, %v2036_v53  ;;  %v2102_v46 = vrot.slane %v2072_v26, 7 }
 0x162   : >> { %v2053_v61 = vadd.f32 %v2052_v13, %v2037_v42  ;;  %v1863_v44 = vadd.f32 %v1851_v41, %v1815_v47 }
 0x163   : >> { %v2103_v30 = vsel %vm1345_vm2, %v2101_v51, %v2102_v46 }
 0x164   : >> { %v2119_v1 = vadd.f32 %v2118_v22, %v2103_v30  ;;  %v1919_v50 = vadd.f32 %v1894_v48, %v1863_v44 }
 0x166   : >> { %v1991_v32 = vadd.f32 %v1967_v34, %v1919_v50 }
 0x168   : >> { %2810 = vst [vmem:[%s3957_s14 + $0x139] sm:$0x7f] %v1991_v32  ;;  %v2038_v17 = vrot.slane %v1991_v32, 7  ;;  %v2073_v45 = vmul.f32 %v1991_v32, %v1991_v32 }
 0x16a   : >> { %v2039_v54 = vsel %vm1345_vm2, %v2036_v53, %v2038_v17  ;;  %v2104_v33 = vrot.slane %v2073_v45, 7 }
 0x16b   : >> { %v2054_v35 = vadd.f32 %v2053_v61, %v2039_v54 }
 0x16c   : >> { %v2105_v29 = vsel %vm1345_vm2, %v2102_v46, %v2104_v33 }
 0x16d   : >> { %v2055_v52 = vrot.slane %v2054_v35, 4  ;;  %v2120_v14 = vadd.f32 %v2119_v1, %v2105_v29 }
 0x16f   : >> { %v2056_v13 = vadd.f32 %v2055_v52, %v2054_v35  ;;  %v2121_v39 = vrot.slane %v2120_v14, 4 }
 0x171   : >> { %v2057_v62 = vrot.slane %v2056_v13, 2  ;;  %v2122_v15 = vadd.f32 %v2121_v39, %v2120_v14 }
 0x173   : >> { %v2058_v22 = vadd.f32 %v2057_v62, %v2056_v13  ;;  %v2123_v60 = vrot.slane %v2122_v15, 2 }
 0x175   : >> { %v2059_v38 = vrot.slane %v2058_v22, 1  ;;  %v2124_v48 = vadd.f32 %v2123_v60, %v2122_v15 }
 0x177   : >> { %v2060_v4 = vadd.f32 %v2059_v38, %v2058_v22  ;;  %v2125_v58 = vrot.slane %v2124_v48, 1  ;;  %1458 = sbr.rel (!%p1456_p12) target bundleno = 261 (0x105), region = 250 }
 0x179   : >> { %v2061_v6 = vadd.f32 %v3007_v40, %v2060_v4   ;;  %v2126_v49 = vadd.f32 %v2125_v58, %v2124_v48 }
 0x17b   : >> { %v2127_v0 = vadd.f32 %v3003_v56, %v2126_v49   ;;  %v4511_v40 = vmov %v2061_v6  ;;  %v2128_v9 = vmul.f32 (%p1456_p12), 0.001953125, %v2061_v6 }
 0x17d   : >> { %v4510_v56 = vmov %v2127_v0  ;;  %v2129_v28 = vmul.f32 (%p1456_p12), 0.001953125, %v2127_v0  ;;  %v2130_v57 = vmul.f32 (%p1456_p12), %v2128_v9, %v2128_v9 }
 0x17f   : > { %v2131_v7 = vsub.f32 %v2129_v28, %v2130_v57 }
 0x181   : > { %v2132_v40 = vadd.f32 0.001, %v2131_v7 }
 0x183   : > { %2931 = vrsqrt.f32 %v2132_v40 }
 0x18d   : > { %v2932_v55 = vpop.eup %2931 }
 0x18e   : > { %v2136_v2 = vmul.f32 %v2932_v55, %v2134_v59 }
 0x190   : > { %v2137_v5 = vmul.f32 %v2136_v2, %v2128_v9 }
 0x192   : > { %v2138_v19 = vsub.f32 %v2135_v8, %v2137_v5 }
 0x193 LB: >> { %v4267_v20 = vrot.slane %v2136_v2, %v3426_v11  ;;  %s2840_s25 = sshll.u32 %s3015_s27, 6  ;;  %s2144_s27 = sadd.s32 1, %s3015_s27   ;;  %s3015_s27 = sphi %s4261_s27, %s2144_s27  }
 0x194   : >> { %s4271_s29 = scalar_lea.vmem %s3408_s30, %s2840_s25 [#allocation5]  ;;  %v4274_v21 = vrot.slane %v2138_v19, %v3426_v11  ;;  %p2141_p13 = scmp.ge.s32.totalorder %s2144_s27, 4  }
 0x195   : >> { %v2148_v23 = vld [vmem:[%s4271_s29] sm:$0xff]  ;;  %v2149_v24 = vld [vmem:[%s4271_s29 + $0x8] sm:$0xff]  ;;  %v2150_v25 = vld [vmem:[%s4271_s29 + $0x10] sm:$0xff]  ;;  %s4311_s20 = smov (%p2141_p13), 0  }
 0x196   : >> { %v2162_v31 = vmul.f32 %v4267_v20, %v2148_v23  ;;  %v2163_v36 = vmul.f32 %v4267_v20, %v2149_v24  ;;  %v2164_v56 = vmul.f32 %v4267_v20, %v2150_v25  ;;  %v2151_v12 = vld [vmem:[%s4271_s29 + $0x18] sm:$0xff]  ;;  %v2152_v3 = vld [vmem:[%s4271_s29 + $0x20] sm:$0xff]  ;;  %v2153_v27 = vld [vmem:[%s4271_s29 + $0x28] sm:$0xff] }
 0x197   : >> { %v2165_v16 = vmul.f32 %v4267_v20, %v2151_v12  ;;  %v2166_v43 = vmul.f32 %v4267_v20, %v2152_v3  ;;  %v2167_v10 = vmul.f32 %v4267_v20, %v2153_v27  ;;  %v2154_v63 = vld [vmem:[%s4271_s29 + $0x30] sm:$0xff]  ;;  %v2155_v41 = vld [vmem:[%s4271_s29 + $0x38] sm:$0xff]  ;;  %2143 = sbr.rel (!%p2141_p13) target bundleno = 403 (0x193), region = 261 }
 0x198   : >> { %v2176_v51 = vadd.f32 %v4274_v21, %v2162_v31  ;;  %v2177_v53 = vadd.f32 %v4274_v21, %v2163_v36  ;;  %v2178_v26 = vadd.f32 %v4274_v21, %v2164_v56  ;;  %v2168_v37 = vmul.f32 %v4267_v20, %v2154_v63 }
 0x199   : >> { %v2179_v18 = vadd.f32 %v4274_v21, %v2165_v16  ;;  %v2180_v42 = vadd.f32 %v4274_v21, %v2166_v43  ;;  %v2181_v46 = vadd.f32 %v4274_v21, %v2167_v10  ;;  %v2169_v47 = vmul.f32 %v4267_v20, %v2155_v41 }
 0x19a   : >> { %2184 = vst [vmem:[%s4271_s29] sm:$0xff] %v2176_v51  ;;  %2185 = vst [vmem:[%s4271_s29 + $0x8] sm:$0xff] %v2177_v53  ;;  %v2182_v61 = vadd.f32 %v4274_v21, %v2168_v37 }
 0x19b   : >> { %2186 = vst [vmem:[%s4271_s29 + $0x10] sm:$0xff] %v2178_v26  ;;  %2187 = vst [vmem:[%s4271_s29 + $0x18] sm:$0xff] %v2179_v18  ;;  %v2183_v30 = vadd.f32 %v4274_v21, %v2169_v47 }
 0x19c   : >> { %2188 = vst [vmem:[%s4271_s29 + $0x20] sm:$0xff] %v2180_v42  ;;  %2189 = vst [vmem:[%s4271_s29 + $0x28] sm:$0xff] %v2181_v46 }
 0x19d   : >> { %2190 = vst [vmem:[%s4271_s29 + $0x30] sm:$0xff] %v2182_v61  ;;  %2191 = vst [vmem:[%s4271_s29 + $0x38] sm:$0xff] %v2183_v30 }
 0x19e LB: >> { %s2813_s28 = sshll.u32 %s3019_s20, 6  ;;  %s2197_s20 = sadd.s32 1, %s3019_s20   ;;  %s3019_s20 = sphi %s4311_s20, %s2197_s20  }
 0x19f   : >> { %s4318_s15 = scalar_lea.vmem %s3408_s30, %s2813_s28 [#allocation5]  ;;  %p2194_p0 = scmp.ge.s32.totalorder %s2197_s20, 4  }
 0x1a4   : >> { %v2814_v11 = vld [vmem:[%s4318_s15 + $0x100] sm:$0xff]  ;;  %v2815_v44 = vld [vmem:[%s4318_s15 + $0x108] sm:$0xff]  ;;  %v2816_v1 = vld [vmem:[%s4318_s15 + $0x110] sm:$0xff] }
 0x1a5   : >> { %v2216_v34 = vmul.f32 %v2814_v11, %v4267_v20  ;;  %v2217_v50 = vmul.f32 %v2815_v44, %v4267_v20  ;;  %v2218_v32 = vmul.f32 %v2816_v1, %v4267_v20  ;;  %v2817_v17 = vld [vmem:[%s4318_s15 + $0x118] sm:$0xff]  ;;  %v2818_v45 = vld [vmem:[%s4318_s15 + $0x120] sm:$0xff]  ;;  %v2819_v54 = vld [vmem:[%s4318_s15 + $0x128] sm:$0xff] }
 0x1a6   : >> { %v2219_v33 = vmul.f32 %v2817_v17, %v4267_v20  ;;  %v2220_v35 = vmul.f32 %v2818_v45, %v4267_v20  ;;  %v2221_v29 = vmul.f32 %v2819_v54, %v4267_v20  ;;  %v2820_v52 = vld [vmem:[%s4318_s15 + $0x130] sm:$0xff]  ;;  %v2821_v14 = vld [vmem:[%s4318_s15 + $0x138] sm:$0xff]  ;;  %2196 = sbr.rel (!%p2194_p0) target bundleno = 414 (0x19e), region = 272 }
 0x1a7   : >> { %v2230_v13 = vadd.f32 %v2216_v34, %v4274_v21  ;;  %v2231_v39 = vadd.f32 %v2217_v50, %v4274_v21  ;;  %v2232_v62 = vadd.f32 %v2218_v32, %v4274_v21  ;;  %v2222_v15 = vmul.f32 %v2820_v52, %v4267_v20 }
 0x1a8   : >> { %v2233_v22 = vadd.f32 %v2219_v33, %v4274_v21  ;;  %v2234_v60 = vadd.f32 %v2220_v35, %v4274_v21  ;;  %v2235_v38 = vadd.f32 %v2221_v29, %v4274_v21  ;;  %v2223_v48 = vmul.f32 %v2821_v14, %v4267_v20 }
 0x1a9   : >> { %2822 = vst [vmem:[%s4318_s15 + $0x100] sm:$0xff] %v2230_v13  ;;  %2823 = vst [vmem:[%s4318_s15 + $0x108] sm:$0xff] %v2231_v39  ;;  %v2236_v4 = vadd.f32 %v2222_v15, %v4274_v21 }
 0x1aa   : >> { %2824 = vst [vmem:[%s4318_s15 + $0x110] sm:$0xff] %v2232_v62  ;;  %2825 = vst [vmem:[%s4318_s15 + $0x118] sm:$0xff] %v2233_v22  ;;  %v2237_v58 = vadd.f32 %v2223_v48, %v4274_v21 }
 0x1ab   : >> { %2826 = vst [vmem:[%s4318_s15 + $0x120] sm:$0xff] %v2234_v60  ;;  %2827 = vst [vmem:[%s4318_s15 + $0x128] sm:$0xff] %v2235_v38 }
 0x1ac   : >> { %2828 = vst [vmem:[%s4318_s15 + $0x130] sm:$0xff] %v2236_v4  ;;  %2829 = vst [vmem:[%s4318_s15 + $0x138] sm:$0xff] %v2237_v58 }
 0x1ad   : > { %2252 = sbr.rel (!%p3082_p5) target bundleno = 469 (0x1d5), region = 144  ;;  %s2831_s5 = sshll.u32 (%p3082_p5), %s3063_s18, 3 }
 0x1ae   : > { %s4364_s8 = scalar_lea.vmem (%p3082_p5), %s4505_s4, %s2831_s5 }
 0x1b3   : > { %v2408_v6 = vld [vmem:[%s3408_s30] sm:$0xff] (%p3082_p5)  ;;  %v2410_v49 = vld [vmem:[%s3408_s30 + $0x8] sm:$0xff] (%p3082_p5)  ;;  %v2412_v0 = vld [vmem:[%s3408_s30 + $0x10] sm:$0xff] (%p3082_p5) }
 0x1b4   : > { %v2414_v9 = vld [vmem:[%s3408_s30 + $0x18] sm:$0xff]  ;;  %v2416_v28 = vld [vmem:[%s3408_s30 + $0x20] sm:$0xff]  ;;  %v2418_v57 = vld [vmem:[%s3408_s30 + $0x28] sm:$0xff]  ;;  %2409 = vst [vmem:[%s4364_s8] sm:$0xff] %v2408_v6 }
 0x1b5   : > { %2411 = vst [vmem:[%s4364_s8 + $0x10] sm:$0xff] %v2410_v49  ;;  %2413 = vst [vmem:[%s4364_s8 + $0x20] sm:$0xff] %v2412_v0  ;;  %v2420_v7 = vld [vmem:[%s3408_s30 + $0x30] sm:$0xff]  ;;  %v2422_v40 = vld [vmem:[%s3408_s30 + $0x38] sm:$0xff] }
 0x1b6   : > { %2415 = vst [vmem:[%s4364_s8 + $0x30] sm:$0xff] %v2414_v9  ;;  %2417 = vst [vmem:[%s4364_s8 + $0x40] sm:$0xff] %v2416_v28  ;;  %v2424_v59 = vld [vmem:[%s3408_s30 + $0x40] sm:$0xff]  ;;  %v2426_v55 = vld [vmem:[%s3408_s30 + $0x48] sm:$0xff] }
 0x1b7   : > { %2419 = vst [vmem:[%s4364_s8 + $0x50] sm:$0xff] %v2418_v57  ;;  %2421 = vst [vmem:[%s4364_s8 + $0x60] sm:$0xff] %v2420_v7  ;;  %v2428_v2 = vld [vmem:[%s3408_s30 + $0x50] sm:$0xff]  ;;  %v2430_v8 = vld [vmem:[%s3408_s30 + $0x58] sm:$0xff] }
 0x1b8   : > { %2423 = vst [vmem:[%s4364_s8 + $0x70] sm:$0xff] %v2422_v40  ;;  %2425 = vst [vmem:[%s4364_s8 + $0x80] sm:$0xff] %v2424_v59  ;;  %v2432_v5 = vld [vmem:[%s3408_s30 + $0x60] sm:$0xff]  ;;  %v2434_v19 = vld [vmem:[%s3408_s30 + $0x68] sm:$0xff] }
 0x1b9   : > { %2427 = vst [vmem:[%s4364_s8 + $0x90] sm:$0xff] %v2426_v55  ;;  %2429 = vst [vmem:[%s4364_s8 + $0xa0] sm:$0xff] %v2428_v2  ;;  %v2436_v20 = vld [vmem:[%s3408_s30 + $0x70] sm:$0xff]  ;;  %v2438_v21 = vld [vmem:[%s3408_s30 + $0x78] sm:$0xff] }
 0x1ba   : > { %2431 = vst [vmem:[%s4364_s8 + $0xb0] sm:$0xff] %v2430_v8  ;;  %2433 = vst [vmem:[%s4364_s8 + $0xc0] sm:$0xff] %v2432_v5  ;;  %v2440_v23 = vld [vmem:[%s3408_s30 + $0x80] sm:$0xff]  ;;  %v2442_v24 = vld [vmem:[%s3408_s30 + $0x88] sm:$0xff] }
 0x1bb   : > { %2435 = vst [vmem:[%s4364_s8 + $0xd0] sm:$0xff] %v2434_v19  ;;  %2437 = vst [vmem:[%s4364_s8 + $0xe0] sm:$0xff] %v2436_v20  ;;  %v2444_v25 = vld [vmem:[%s3408_s30 + $0x90] sm:$0xff]  ;;  %v2446_v31 = vld [vmem:[%s3408_s30 + $0x98] sm:$0xff] }
 0x1bc   : > { %2439 = vst [vmem:[%s4364_s8 + $0xf0] sm:$0xff] %v2438_v21  ;;  %2441 = vst [vmem:[%s4364_s8 + $0x100] sm:$0xff] %v2440_v23  ;;  %v2448_v36 = vld [vmem:[%s3408_s30 + $0xa0] sm:$0xff]  ;;  %v2450_v56 = vld [vmem:[%s3408_s30 + $0xa8] sm:$0xff] }
 0x1bd   : > { %2443 = vst [vmem:[%s4364_s8 + $0x110] sm:$0xff] %v2442_v24  ;;  %2445 = vst [vmem:[%s4364_s8 + $0x120] sm:$0xff] %v2444_v25  ;;  %v2452_v12 = vld [vmem:[%s3408_s30 + $0xb0] sm:$0xff]  ;;  %v2454_v3 = vld [vmem:[%s3408_s30 + $0xb8] sm:$0xff] }
 0x1be   : > { %2447 = vst [vmem:[%s4364_s8 + $0x130] sm:$0xff] %v2446_v31  ;;  %2449 = vst [vmem:[%s4364_s8 + $0x140] sm:$0xff] %v2448_v36  ;;  %v2456_v27 = vld [vmem:[%s3408_s30 + $0xc0] sm:$0xff]  ;;  %v2458_v16 = vld [vmem:[%s3408_s30 + $0xc8] sm:$0xff] }
 0x1bf   : > { %2451 = vst [vmem:[%s4364_s8 + $0x150] sm:$0xff] %v2450_v56  ;;  %2453 = vst [vmem:[%s4364_s8 + $0x160] sm:$0xff] %v2452_v12  ;;  %v2460_v43 = vld [vmem:[%s3408_s30 + $0xd0] sm:$0xff]  ;;  %v2462_v10 = vld [vmem:[%s3408_s30 + $0xd8] sm:$0xff] }
 0x1c0   : > { %2455 = vst [vmem:[%s4364_s8 + $0x170] sm:$0xff] %v2454_v3  ;;  %2457 = vst [vmem:[%s4364_s8 + $0x180] sm:$0xff] %v2456_v27  ;;  %v2464_v63 = vld [vmem:[%s3408_s30 + $0xe0] sm:$0xff]  ;;  %v2466_v41 = vld [vmem:[%s3408_s30 + $0xe8] sm:$0xff] }
 0x1c1   : > { %2459 = vst [vmem:[%s4364_s8 + $0x190] sm:$0xff] %v2458_v16  ;;  %2461 = vst [vmem:[%s4364_s8 + $0x1a0] sm:$0xff] %v2460_v43  ;;  %v2468_v51 = vld [vmem:[%s3408_s30 + $0xf0] sm:$0xff]  ;;  %v2470_v53 = vld [vmem:[%s3408_s30 + $0xf8] sm:$0xff] }
 0x1c2   : > { %2463 = vst [vmem:[%s4364_s8 + $0x1b0] sm:$0xff] %v2462_v10  ;;  %2465 = vst [vmem:[%s4364_s8 + $0x1c0] sm:$0xff] %v2464_v63  ;;  %v2472_v26 = vld [vmem:[%s3408_s30 + $0x100] sm:$0xff]  ;;  %v2474_v37 = vld [vmem:[%s3408_s30 + $0x108] sm:$0xff] }
 0x1c3   : > { %2467 = vst [vmem:[%s4364_s8 + $0x1d0] sm:$0xff] %v2466_v41  ;;  %2469 = vst [vmem:[%s4364_s8 + $0x1e0] sm:$0xff] %v2468_v51  ;;  %v2476_v18 = vld [vmem:[%s3408_s30 + $0x110] sm:$0xff]  ;;  %v2478_v42 = vld [vmem:[%s3408_s30 + $0x118] sm:$0xff] }
 0x1c4   : > { %2471 = vst [vmem:[%s4364_s8 + $0x1f0] sm:$0xff] %v2470_v53  ;;  %2473 = vst [vmem:[%s4364_s8 + $0x200] sm:$0xff] %v2472_v26  ;;  %v2480_v46 = vld [vmem:[%s3408_s30 + $0x120] sm:$0xff]  ;;  %v2482_v47 = vld [vmem:[%s3408_s30 + $0x128] sm:$0xff] }
 0x1c5   : > { %2475 = vst [vmem:[%s4364_s8 + $0x210] sm:$0xff] %v2474_v37  ;;  %2477 = vst [vmem:[%s4364_s8 + $0x220] sm:$0xff] %v2476_v18  ;;  %v2484_v61 = vld [vmem:[%s3408_s30 + $0x130] sm:$0xff]  ;;  %v2486_v30 = vld [vmem:[%s3408_s30 + $0x138] sm:$0xff] }
 0x1c6   : > { %2479 = vst [vmem:[%s4364_s8 + $0x230] sm:$0xff] %v2478_v42  ;;  %2481 = vst [vmem:[%s4364_s8 + $0x240] sm:$0xff] %v2480_v46  ;;  %v2488_v11 = vld [vmem:[%s3408_s30 + $0x140] sm:$0xff]  ;;  %v2490_v44 = vld [vmem:[%s3408_s30 + $0x148] sm:$0xff] }
 0x1c7   : > { %2483 = vst [vmem:[%s4364_s8 + $0x250] sm:$0xff] %v2482_v47  ;;  %2485 = vst [vmem:[%s4364_s8 + $0x260] sm:$0xff] %v2484_v61  ;;  %v2492_v1 = vld [vmem:[%s3408_s30 + $0x150] sm:$0xff]  ;;  %v2494_v34 = vld [vmem:[%s3408_s30 + $0x158] sm:$0xff] }
 0x1c8   : > { %2487 = vst [vmem:[%s4364_s8 + $0x270] sm:$0xff] %v2486_v30  ;;  %2489 = vst [vmem:[%s4364_s8 + $0x280] sm:$0xff] %v2488_v11  ;;  %v2496_v50 = vld [vmem:[%s3408_s30 + $0x160] sm:$0xff]  ;;  %v2498_v32 = vld [vmem:[%s3408_s30 + $0x168] sm:$0xff] }
 0x1c9   : > { %2491 = vst [vmem:[%s4364_s8 + $0x290] sm:$0xff] %v2490_v44  ;;  %2493 = vst [vmem:[%s4364_s8 + $0x2a0] sm:$0xff] %v2492_v1  ;;  %v2500_v17 = vld [vmem:[%s3408_s30 + $0x170] sm:$0xff]  ;;  %v2502_v45 = vld [vmem:[%s3408_s30 + $0x178] sm:$0xff] }
 0x1ca   : > { %2495 = vst [vmem:[%s4364_s8 + $0x2b0] sm:$0xff] %v2494_v34  ;;  %2497 = vst [vmem:[%s4364_s8 + $0x2c0] sm:$0xff] %v2496_v50  ;;  %v2504_v54 = vld [vmem:[%s3408_s30 + $0x180] sm:$0xff]  ;;  %v2506_v33 = vld [vmem:[%s3408_s30 + $0x188] sm:$0xff] }
 0x1cb   : > { %2499 = vst [vmem:[%s4364_s8 + $0x2d0] sm:$0xff] %v2498_v32  ;;  %2501 = vst [vmem:[%s4364_s8 + $0x2e0] sm:$0xff] %v2500_v17  ;;  %v2508_v35 = vld [vmem:[%s3408_s30 + $0x190] sm:$0xff]  ;;  %v2510_v29 = vld [vmem:[%s3408_s30 + $0x198] sm:$0xff] }
 0x1cc   : > { %2503 = vst [vmem:[%s4364_s8 + $0x2f0] sm:$0xff] %v2502_v45  ;;  %2505 = vst [vmem:[%s4364_s8 + $0x300] sm:$0xff] %v2504_v54  ;;  %v2512_v52 = vld [vmem:[%s3408_s30 + $0x1a0] sm:$0xff]  ;;  %v2514_v14 = vld [vmem:[%s3408_s30 + $0x1a8] sm:$0xff] }
 0x1cd   : > { %2507 = vst [vmem:[%s4364_s8 + $0x310] sm:$0xff] %v2506_v33  ;;  %2509 = vst [vmem:[%s4364_s8 + $0x320] sm:$0xff] %v2508_v35  ;;  %v2516_v13 = vld [vmem:[%s3408_s30 + $0x1b0] sm:$0xff]  ;;  %v2518_v39 = vld [vmem:[%s3408_s30 + $0x1b8] sm:$0xff] }
 0x1ce   : > { %2511 = vst [vmem:[%s4364_s8 + $0x330] sm:$0xff] %v2510_v29  ;;  %2513 = vst [vmem:[%s4364_s8 + $0x340] sm:$0xff] %v2512_v52  ;;  %v2520_v62 = vld [vmem:[%s3408_s30 + $0x1c0] sm:$0xff]  ;;  %v2522_v15 = vld [vmem:[%s3408_s30 + $0x1c8] sm:$0xff] }
 0x1cf   : > { %2515 = vst [vmem:[%s4364_s8 + $0x350] sm:$0xff] %v2514_v14  ;;  %2517 = vst [vmem:[%s4364_s8 + $0x360] sm:$0xff] %v2516_v13  ;;  %v2524_v22 = vld [vmem:[%s3408_s30 + $0x1d0] sm:$0xff]  ;;  %v2526_v60 = vld [vmem:[%s3408_s30 + $0x1d8] sm:$0xff] }
 0x1d0   : > { %2519 = vst [vmem:[%s4364_s8 + $0x370] sm:$0xff] %v2518_v39  ;;  %2521 = vst [vmem:[%s4364_s8 + $0x380] sm:$0xff] %v2520_v62  ;;  %v2528_v38 = vld [vmem:[%s3408_s30 + $0x1e0] sm:$0xff]  ;;  %v2530_v48 = vld [vmem:[%s3408_s30 + $0x1e8] sm:$0xff] }
 0x1d1   : > { %2523 = vst [vmem:[%s4364_s8 + $0x390] sm:$0xff] %v2522_v15  ;;  %2525 = vst [vmem:[%s4364_s8 + $0x3a0] sm:$0xff] %v2524_v22  ;;  %v2532_v4 = vld [vmem:[%s3408_s30 + $0x1f0] sm:$0xff]  ;;  %v2534_v58 = vld [vmem:[%s3408_s30 + $0x1f8] sm:$0xff] }
 0x1d2   : > { %2527 = vst [vmem:[%s4364_s8 + $0x3b0] sm:$0xff] %v2526_v60  ;;  %2529 = vst [vmem:[%s4364_s8 + $0x3c0] sm:$0xff] %v2528_v38 }
 0x1d3   : > { %2531 = vst [vmem:[%s4364_s8 + $0x3d0] sm:$0xff] %v2530_v48  ;;  %2533 = vst [vmem:[%s4364_s8 + $0x3e0] sm:$0xff] %v2532_v4 }
 0x1d4   : > { %2535 = vst [vmem:[%s4364_s8 + $0x3f0] sm:$0xff] %v2534_v58 }
 0x1d5 PF: > { %p11_p1 = scmp.ge.s32.totalorder %s3066_s19, 4   ;;  %s4512_s15 = smov %s2983_s16 }
 0x1d6   : > { %s4513_s16 = smov %s3076_s22  ;;  %s4514_s17 = smov %s3066_s19 }
 0x1d7   :  { %13 = sbr.rel (!%p11_p1) target bundleno = 2 (0x2), region = 283 }

</bundles_post_ra>
